<compile_context>
chip_gen: v5e
topology: v5e:2x2
jax: 0.10.0
libtpu: 0.0.40
codegen_flags: <defaults>
</compile_context>

<pallas_src>
import math
import functools

import jax
import jax.numpy as jnp
from jax import lax
from jax.experimental import pallas as pl
from jax.experimental.pallas import tpu as pltpu

# ---- flif_neuron constants (from flif_neuron.__init__) ----
DT = 0.1
THRESHOLD = -50.0
V_INIT = -70.0
VL = -70.0
V_RESET = -70.0
GL = 0.0025
CM = 0.5


def fsnn_kernel(ih_ref, wo_ref, bo_ref,
                out_spk_ref, hid_spk_ref, vhid_ref, vout_ref,
                *, alpha, ts, t_total, t_padded):
    """One grid step == one chunk of `ts` FSNN.forward() timesteps."""
    c = pl.program_id(0)
    needs_mask = (t_padded != t_total)          # trace-time Python bool

    # Scalar coefficients, trace-time constants (no per-step selects).
    s1 = DT * GL / CM                                   # N == 1:  dt / tau
    sf = (DT ** alpha) * math.gamma(2.0 - alpha) / CM   # N >= 2:  fractional

    # Hoist resident operands out of the step loop (JAX does not CSE
    # broadcast_in_dim inside loops).
    w_o = wo_ref[...]                                    # bf16 (Nhp, Nop), resident
    b_o = jnp.broadcast_to(bo_ref[...], vout_ref.shape)  # f32  (Bp, Nop)

    def layer_step(cur, v_old, s, g, k):
        # V_new = V_old + s*(-g*(V_old - VL) + k*I); spike on PRE-update membrane,
        # reset applied to the updated V -- exactly as flif_neuron.forward.
        v_new = v_old + s * (-g * (v_old - VL) + k * cur)
        spike = (v_old - THRESHOLD > 0.0).astype(jnp.float32)
        v_new = v_new - spike * (v_new - V_RESET)
        return spike, v_new

    def do_step(si, s, g, k):
        # hidden layer: precomputed current (hoisted matmul), elementwise update
        i_hid = ih_ref[si]
        hid_spk, v_hid = layer_step(i_hid, vhid_ref[...], s, g, k)
        hid_spk_ref[si] = hid_spk
        vhid_ref[...] = v_hid
        # output Linear on the NEW hidden spikes (matches FSNN.forward ordering)
        i_out = jnp.dot(hid_spk.astype(jnp.bfloat16), w_o,
                        preferred_element_type=jnp.float32) + b_o
        out_spk, v_out = layer_step(i_out, vout_ref[...], s, g, k)
        out_spk_ref[si] = out_spk
        vout_ref[...] = v_out

    def run_frac(lo):
        # local steps lo .. ts-1, all with the N >= 2 coefficients
        def body(si, carry):
            if needs_mask:
                @pl.when(c * ts + si < t_total)
                def _():
                    do_step(si, sf, GL, 1.0)
            else:
                do_step(si, sf, GL, 1.0)
            return carry
        lax.fori_loop(lo, ts, body, 0, unroll=True)

    @pl.when(c == 0)
    def _first_chunk():
        # global step 0 (N == 0): spike = 0, V = V_init, input ignored.
        hid_spk_ref[0] = jnp.zeros(hid_spk_ref.shape[1:], jnp.float32)
        out_spk_ref[0] = jnp.zeros(out_spk_ref.shape[1:], jnp.float32)
        vhid_ref[...] = jnp.full(vhid_ref.shape, V_INIT, jnp.float32)
        vout_ref[...] = jnp.full(vout_ref.shape, V_INIT, jnp.float32)
        if t_total >= 2:
            # global step 1 (N == 1): first-order Euler coefficients.
            do_step(1, s1, 1.0, 1.0 / GL)
        if ts > 2:
            run_frac(2)

    @pl.when(c > 0)
    def _later_chunks():
        run_frac(0)


def _round_up(x, m):
    return ((x + m - 1) // m) * m


def _pad_to(x, target_shape):
    pads = [(0, t - s) for s, t in zip(x.shape, target_shape)]
    return jnp.pad(x, pads)


def fsnn_forward(data_seq, wh, bh, wo, bo, *, alpha, ts=16):
    """Run num_steps = data_seq.shape[0] FSNN.forward() steps.

    data_seq : (T, B, num_input) input spikes per step
    wh, bh   : hidden Linear weight (Nh, Ni) and bias (Nh,)  [torch layout]
    wo, bo   : output Linear weight (No, Nh) and bias (No,)

    Returns (out_spk_seq (T,B,No), hid_spk_seq (T,B,Nh),
             v_hid_final (B,Nh), v_out_final (B,No)).
    """
    T, B, Ni = data_seq.shape
    Nh = wh.shape[0]
    No = wo.shape[0]

    # Timestep chunk size (>= 2 so global steps 0 and 1 both land in chunk 0).
    ts = int(max(2, min(ts, T)))
    num_chunks = -(-T // ts)
    Tp = num_chunks * ts

    # Pad to hardware tiles: batch -> 8 sublanes, features -> 128 lanes.
    Bp = _round_up(B, 8)
    Nhp = _round_up(Nh, 128)
    Nop = _round_up(No, 128)

    # Hoisted, state-independent hidden-layer affine: one large matmul in XLA
    # instead of T tiny 8-row MXU ops on the serial recurrence path.
    i_hid = jnp.einsum("tbi,hi->tbh", data_seq.astype(jnp.float32),
                       wh.astype(jnp.float32)) + bh.astype(jnp.float32)

    ih_p = _pad_to(i_hid, (Tp, Bp, Nhp))                                # f32 currents
    wo_t = _pad_to(wo.T.astype(jnp.float32), (Nhp, Nop)).astype(jnp.bfloat16)
    bo_p = _pad_to(bo.reshape(1, No).astype(jnp.float32), (1, Nop))

    grid_spec = pltpu.PrefetchScalarGridSpec(
        num_scalar_prefetch=0,
        grid=(num_chunks,),
        in_specs=[
            pl.BlockSpec((ts, Bp, Nhp), lambda c: (c, 0, 0)),   # hidden currents / chunk
            pl.BlockSpec((Nhp, Nop), lambda c: (0, 0)),         # W_o^T (bf16, resident)
            pl.BlockSpec((1, Nop), lambda c: (0, 0)),           # b_o   (resident)
        ],
        out_specs=(
            pl.BlockSpec((ts, Bp, Nop), lambda c: (c, 0, 0)),   # output spikes / chunk
            pl.BlockSpec((ts, Bp, Nhp), lambda c: (c, 0, 0)),   # hidden spikes / chunk
            pl.BlockSpec((Bp, Nhp), lambda c: (0, 0)),          # hidden V (VMEM-resident state)
            pl.BlockSpec((Bp, Nop), lambda c: (0, 0)),          # output V (VMEM-resident state)
        ),
    )
    out_shapes = (
        jax.ShapeDtypeStruct((Tp, Bp, Nop), jnp.float32),
        jax.ShapeDtypeStruct((Tp, Bp, Nhp), jnp.float32),
        jax.ShapeDtypeStruct((Bp, Nhp), jnp.float32),
        jax.ShapeDtypeStruct((Bp, Nop), jnp.float32),
    )

    out_spk, hid_spk, v_hid, v_out = pl.pallas_call(
        functools.partial(fsnn_kernel, alpha=alpha, ts=ts, t_total=T, t_padded=Tp),
        grid_spec=grid_spec,
        out_shape=out_shapes,
        compiler_params=pltpu.CompilerParams(
            dimension_semantics=("arbitrary",)),    # timestep recurrence
    )(ih_p, wo_t, bo_p)

    # strip padding (time, batch, features)
    return (out_spk[:T, :B, :No], hid_spk[:T, :B, :Nh],
            v_hid[:B, :Nh], v_out[:B, :No])


def _linear_init(key, fan_in, fan_out):
    """Deterministic stand-in for torch.nn.Linear default init."""
    kw, kb = jax.random.split(key)
    bound = 1.0 / math.sqrt(fan_in)
    w = jax.random.uniform(kw, (fan_out, fan_in), jnp.float32, -bound, bound)
    b = jax.random.uniform(kb, (fan_out,), jnp.float32, -bound, bound)
    return w, b


if __name__ == "__main__":
    num_input, num_hidden, num_output = 16, 32, 8
    num_steps = 8
    batch = 4
    alpha = 0.2

    key = jax.random.PRNGKey(0)
    k_h, k_o, k_d = jax.random.split(key, 3)

    # forward_hidden: nn.Linear(num_input, num_hidden)
    wh, bh = _linear_init(k_h, num_input, num_hidden)
    # forward_output: nn.Linear(num_hidden, num_output), weight = |weight * 30|
    wo, bo = _linear_init(k_o, num_hidden, num_output)
    wo = jnp.abs(wo * 30.0)

    # input spikes per step (module is fed one data vector per forward() call)
    data_seq = (jax.random.uniform(k_d, (num_steps, batch, num_input)) > 0.5
                ).astype(jnp.float32)

    fwd = jax.jit(functools.partial(fsnn_forward, alpha=alpha))
    out_spk, hid_spk, v_hid, v_out = fwd(data_seq, wh, bh, wo, bo)

    jax.block_until_ready((out_spk, hid_spk, v_hid, v_out))
    print("KERNEL_OK")
</pallas_src>

<mosaic_0001>
module attributes {stable_mosaic.version = 11 : i64} {
  func.func @fsnn_kernel(%arg0: i32, %arg1: memref<8x8x128xf32, #tpu.memory_space<vmem>>, %arg2: memref<128x128xbf16, #tpu.memory_space<vmem>>, %arg3: memref<1x128xf32, #tpu.memory_space<vmem>>, %arg4: memref<8x8x128xf32, #tpu.memory_space<vmem>>, %arg5: memref<8x8x128xf32, #tpu.memory_space<vmem>>, %arg6: memref<8x128xf32, #tpu.memory_space<vmem>>, %arg7: memref<8x128xf32, #tpu.memory_space<vmem>>) attributes {dimension_semantics = [#tpu.dimension_semantics<arbitrary>], iteration_bounds = array<i64: 1>, scalar_prefetch = 0 : i64, scratch_operands = 0 : i64, tpu.core_type = #tpu.core_type<tc>, window_params = [{transform_indices = @transform_0, window_bounds = array<i64: 8, 8, 128>}, {pipeline_mode = #tpu.pipeline_mode<synchronous>, transform_indices = @transform_1, window_bounds = array<i64: 128, 128>}, {pipeline_mode = #tpu.pipeline_mode<synchronous>, transform_indices = @transform_2, window_bounds = array<i64: 1, 128>}, {transform_indices = @transform_3, window_bounds = array<i64: 8, 8, 128>}, {transform_indices = @transform_4, window_bounds = array<i64: 8, 8, 128>}, {pipeline_mode = #tpu.pipeline_mode<synchronous>, transform_indices = @transform_5, window_bounds = array<i64: 8, 128>}, {pipeline_mode = #tpu.pipeline_mode<synchronous>, transform_indices = @transform_6, window_bounds = array<i64: 8, 128>}]} {
    %c0 = arith.constant 0 : index
    %c0_0 = arith.constant 0 : index
    %0 = vector.load %arg2[%c0, %c0_0] : memref<128x128xbf16, #tpu.memory_space<vmem>>, vector<128x128xbf16>
    %c0_1 = arith.constant 0 : index
    %c0_2 = arith.constant 0 : index
    %1 = vector.load %arg3[%c0_1, %c0_2] : memref<1x128xf32, #tpu.memory_space<vmem>>, vector<1x128xf32>
    %2 = vector.shape_cast %1 : vector<1x128xf32> to vector<1x128xf32>
    %3 = vector.broadcast %2 : vector<1x128xf32> to vector<8x128xf32>
    %c0_i32 = arith.constant 0 : i32
    %4 = arith.cmpi eq, %arg0, %c0_i32 : i32
    %5 = arith.extui %4 : i1 to i32
    %c0_i32_3 = arith.constant 0 : i32
    %6 = arith.cmpi ne, %5, %c0_i32_3 : i32
    scf.if %6 {
      %cst = arith.constant 0.000000e+00 : f32
      %10 = vector.broadcast %cst : f32 to vector<8x128xf32>
      %c0_6 = arith.constant 0 : index
      %c0_7 = arith.constant 0 : index
      %c0_8 = arith.constant 0 : index
      %11 = vector.load %arg5[%c0_6, %c0_7, %c0_8] : memref<8x8x128xf32, #tpu.memory_space<vmem>>, vector<1x8x128xf32>
      %12 = vector.shape_cast %11 : vector<1x8x128xf32> to vector<8x128xf32>
      %13 = vector.shape_cast %10 : vector<8x128xf32> to vector<1x8x128xf32>
      tpu.vector_store %arg5[%c0_6, %c0_7, %c0_8], %13 {strides = array<i32>} : memref<8x8x128xf32, #tpu.memory_space<vmem>>, vector<1x8x128xf32>,
      %cst_9 = arith.constant 0.000000e+00 : f32
      %14 = vector.broadcast %cst_9 : f32 to vector<8x128xf32>
      %c0_10 = arith.constant 0 : index
      %c0_11 = arith.constant 0 : index
      %c0_12 = arith.constant 0 : index
      %15 = vector.load %arg4[%c0_10, %c0_11, %c0_12] : memref<8x8x128xf32, #tpu.memory_space<vmem>>, vector<1x8x128xf32>
      %16 = vector.shape_cast %15 : vector<1x8x128xf32> to vector<8x128xf32>
      %17 = vector.shape_cast %14 : vector<8x128xf32> to vector<1x8x128xf32>
      tpu.vector_store %arg4[%c0_10, %c0_11, %c0_12], %17 {strides = array<i32>} : memref<8x8x128xf32, #tpu.memory_space<vmem>>, vector<1x8x128xf32>,
      %cst_13 = arith.constant -7.000000e+01 : f32
      %18 = vector.broadcast %cst_13 : f32 to vector<8x128xf32>
      %c0_14 = arith.constant 0 : index
      %c0_15 = arith.constant 0 : index
      %19 = vector.load %arg6[%c0_14, %c0_15] : memref<8x128xf32, #tpu.memory_space<vmem>>, vector<8x128xf32>
      tpu.vector_store %arg6[%c0_14, %c0_15], %18 {strides = array<i32>} : memref<8x128xf32, #tpu.memory_space<vmem>>, vector<8x128xf32>,
      %cst_16 = arith.constant -7.000000e+01 : f32
      %20 = vector.broadcast %cst_16 : f32 to vector<8x128xf32>
      %c0_17 = arith.constant 0 : index
      %c0_18 = arith.constant 0 : index
      %21 = vector.load %arg7[%c0_17, %c0_18] : memref<8x128xf32, #tpu.memory_space<vmem>>, vector<8x128xf32>
      tpu.vector_store %arg7[%c0_17, %c0_18], %20 {strides = array<i32>} : memref<8x128xf32, #tpu.memory_space<vmem>>, vector<8x128xf32>,
      %c1 = arith.constant 1 : index
      %c0_19 = arith.constant 0 : index
      %c0_20 = arith.constant 0 : index
      %22 = vector.load %arg1[%c1, %c0_19, %c0_20] : memref<8x8x128xf32, #tpu.memory_space<vmem>>, vector<1x8x128xf32>
      %23 = vector.shape_cast %22 : vector<1x8x128xf32> to vector<8x128xf32>
      %c0_21 = arith.constant 0 : index
      %c0_22 = arith.constant 0 : index
      %24 = vector.load %arg6[%c0_21, %c0_22] : memref<8x128xf32, #tpu.memory_space<vmem>>, vector<8x128xf32>
      %cst_23 = arith.constant -7.000000e+01 : f32
      %25 = vector.broadcast %cst_23 : f32 to vector<8x128xf32>
      %26 = arith.subf %24, %25 : vector<8x128xf32>
      %cst_24 = arith.constant -1.000000e+00 : f32
      %27 = vector.broadcast %cst_24 : f32 to vector<8x128xf32>
      %28 = arith.mulf %27, %26 : vector<8x128xf32>
      %cst_25 = arith.constant 4.000000e+02 : f32
      %29 = vector.broadcast %cst_25 : f32 to vector<8x128xf32>
      %30 = arith.mulf %29, %23 : vector<8x128xf32>
      %31 = arith.addf %28, %30 : vector<8x128xf32>
      %cst_26 = arith.constant 5.000000e-04 : f32
      %32 = vector.broadcast %cst_26 : f32 to vector<8x128xf32>
      %33 = arith.mulf %32, %31 : vector<8x128xf32>
      %34 = arith.addf %24, %33 : vector<8x128xf32>
      %cst_27 = arith.constant -5.000000e+01 : f32
      %35 = vector.broadcast %cst_27 : f32 to vector<8x128xf32>
      %36 = arith.subf %24, %35 : vector<8x128xf32>
      %cst_28 = arith.constant 0.000000e+00 : f32
      %37 = vector.broadcast %cst_28 : f32 to vector<8x128xf32>
      %38 = arith.cmpf ogt, %36, %37 : vector<8x128xf32>
      %39 = arith.extui %38 : vector<8x128xi1> to vector<8x128xi32>
      %40 = arith.sitofp %39 : vector<8x128xi32> to vector<8x128xf32>
      %cst_29 = arith.constant -7.000000e+01 : f32
      %41 = vector.broadcast %cst_29 : f32 to vector<8x128xf32>
      %42 = arith.subf %34, %41 : vector<8x128xf32>
      %43 = arith.mulf %40, %42 : vector<8x128xf32>
      %44 = arith.subf %34, %43 : vector<8x128xf32>
      %c1_30 = arith.constant 1 : index
      %c0_31 = arith.constant 0 : index
      %c0_32 = arith.constant 0 : index
      %45 = vector.load %arg5[%c1_30, %c0_31, %c0_32] : memref<8x8x128xf32, #tpu.memory_space<vmem>>, vector<1x8x128xf32>
      %46 = vector.shape_cast %45 : vector<1x8x128xf32> to vector<8x128xf32>
      %47 = vector.shape_cast %40 : vector<8x128xf32> to vector<1x8x128xf32>
      tpu.vector_store %arg5[%c1_30, %c0_31, %c0_32], %47 {strides = array<i32>} : memref<8x8x128xf32, #tpu.memory_space<vmem>>, vector<1x8x128xf32>,
      %c0_33 = arith.constant 0 : index
      %c0_34 = arith.constant 0 : index
      %48 = vector.load %arg6[%c0_33, %c0_34] : memref<8x128xf32, #tpu.memory_space<vmem>>, vector<8x128xf32>
      tpu.vector_store %arg6[%c0_33, %c0_34], %44 {strides = array<i32>} : memref<8x128xf32, #tpu.memory_space<vmem>>, vector<8x128xf32>,
      %49 = arith.truncf %40 : vector<8x128xf32> to vector<8x128xbf16>
      %cst_35 = arith.constant dense<0.000000e+00> : vector<8x128xf32>
      %50 = tpu.matmul %49, %0, %cst_35 {dimension_numbers = #tpu.dot_dimension_numbers<[1], [0], [0], [1], [0, 0, 1, 1], [], []>} : vector<8x128xbf16>, vector<128x128xbf16>, vector<8x128xf32> -> vector<8x128xf32>
      %51 = arith.addf %50, %3 : vector<8x128xf32>
      %c0_36 = arith.constant 0 : index
      %c0_37 = arith.constant 0 : index
      %52 = vector.load %arg7[%c0_36, %c0_37] : memref<8x128xf32, #tpu.memory_space<vmem>>, vector<8x128xf32>
      %cst_38 = arith.constant -7.000000e+01 : f32
      %53 = vector.broadcast %cst_38 : f32 to vector<8x128xf32>
      %54 = arith.subf %52, %53 : vector<8x128xf32>
      %cst_39 = arith.constant -1.000000e+00 : f32
      %55 = vector.broadcast %cst_39 : f32 to vector<8x128xf32>
      %56 = arith.mulf %55, %54 : vector<8x128xf32>
      %cst_40 = arith.constant 4.000000e+02 : f32
      %57 = vector.broadcast %cst_40 : f32 to vector<8x128xf32>
      %58 = arith.mulf %57, %51 : vector<8x128xf32>
      %59 = arith.addf %56, %58 : vector<8x128xf32>
      %cst_41 = arith.constant 5.000000e-04 : f32
      %60 = vector.broadcast %cst_41 : f32 to vector<8x128xf32>
      %61 = arith.mulf %60, %59 : vector<8x128xf32>
      %62 = arith.addf %52, %61 : vector<8x128xf32>
      %cst_42 = arith.constant -5.000000e+01 : f32
      %63 = vector.broadcast %cst_42 : f32 to vector<8x128xf32>
      %64 = arith.subf %52, %63 : vector<8x128xf32>
      %cst_43 = arith.constant 0.000000e+00 : f32
      %65 = vector.broadcast %cst_43 : f32 to vector<8x128xf32>
      %66 = arith.cmpf ogt, %64, %65 : vector<8x128xf32>
      %67 = arith.extui %66 : vector<8x128xi1> to vector<8x128xi32>
      %68 = arith.sitofp %67 : vector<8x128xi32> to vector<8x128xf32>
      %cst_44 = arith.constant -7.000000e+01 : f32
      %69 = vector.broadcast %cst_44 : f32 to vector<8x128xf32>
      %70 = arith.subf %62, %69 : vector<8x128xf32>
      %71 = arith.mulf %68, %70 : vector<8x128xf32>
      %72 = arith.subf %62, %71 : vector<8x128xf32>
      %c1_45 = arith.constant 1 : index
      %c0_46 = arith.constant 0 : index
      %c0_47 = arith.constant 0 : index
      %73 = vector.load %arg4[%c1_45, %c0_46, %c0_47] : memref<8x8x128xf32, #tpu.memory_space<vmem>>, vector<1x8x128xf32>
      %74 = vector.shape_cast %73 : vector<1x8x128xf32> to vector<8x128xf32>
      %75 = vector.shape_cast %68 : vector<8x128xf32> to vector<1x8x128xf32>
      tpu.vector_store %arg4[%c1_45, %c0_46, %c0_47], %75 {strides = array<i32>} : memref<8x8x128xf32, #tpu.memory_space<vmem>>, vector<1x8x128xf32>,
      %c0_48 = arith.constant 0 : index
      %c0_49 = arith.constant 0 : index
      %76 = vector.load %arg7[%c0_48, %c0_49] : memref<8x128xf32, #tpu.memory_space<vmem>>, vector<8x128xf32>
      tpu.vector_store %arg7[%c0_48, %c0_49], %72 {strides = array<i32>} : memref<8x128xf32, #tpu.memory_space<vmem>>, vector<8x128xf32>,
      %c2_i32 = arith.constant 2 : i32
      %77 = arith.index_cast %c2_i32 : i32 to index
      %c0_50 = arith.constant 0 : index
      %c0_51 = arith.constant 0 : index
      %78 = vector.load %arg1[%77, %c0_50, %c0_51] : memref<8x8x128xf32, #tpu.memory_space<vmem>>, vector<1x8x128xf32>
      %79 = vector.shape_cast %78 : vector<1x8x128xf32> to vector<8x128xf32>
      %c0_52 = arith.constant 0 : index
      %c0_53 = arith.constant 0 : index
      %80 = vector.load %arg6[%c0_52, %c0_53] : memref<8x128xf32, #tpu.memory_space<vmem>>, vector<8x128xf32>
      %cst_54 = arith.constant -7.000000e+01 : f32
      %81 = vector.broadcast %cst_54 : f32 to vector<8x128xf32>
      %82 = arith.subf %80, %81 : vector<8x128xf32>
      %cst_55 = arith.constant -2.500000e-03 : f32
      %83 = vector.broadcast %cst_55 : f32 to vector<8x128xf32>
      %84 = arith.mulf %83, %82 : vector<8x128xf32>
      %cst_56 = arith.constant 1.000000e+00 : f32
      %85 = vector.broadcast %cst_56 : f32 to vector<8x128xf32>
      %86 = arith.mulf %85, %79 : vector<8x128xf32>
      %87 = arith.addf %84, %86 : vector<8x128xf32>
      %cst_57 = arith.constant 1.17532682 : f32
      %88 = vector.broadcast %cst_57 : f32 to vector<8x128xf32>
      %89 = arith.mulf %88, %87 : vector<8x128xf32>
      %90 = arith.addf %80, %89 : vector<8x128xf32>
      %cst_58 = arith.constant -5.000000e+01 : f32
      %91 = vector.broadcast %cst_58 : f32 to vector<8x128xf32>
      %92 = arith.subf %80, %91 : vector<8x128xf32>
      %cst_59 = arith.constant 0.000000e+00 : f32
      %93 = vector.broadcast %cst_59 : f32 to vector<8x128xf32>
      %94 = arith.cmpf ogt, %92, %93 : vector<8x128xf32>
      %95 = arith.extui %94 : vector<8x128xi1> to vector<8x128xi32>
      %96 = arith.sitofp %95 : vector<8x128xi32> to vector<8x128xf32>
      %cst_60 = arith.constant -7.000000e+01 : f32
      %97 = vector.broadcast %cst_60 : f32 to vector<8x128xf32>
      %98 = arith.subf %90, %97 : vector<8x128xf32>
      %99 = arith.mulf %96, %98 : vector<8x128xf32>
      %100 = arith.subf %90, %99 : vector<8x128xf32>
      %101 = arith.index_cast %c2_i32 : i32 to index
      %c0_61 = arith.constant 0 : index
      %c0_62 = arith.constant 0 : index
      %102 = vector.load %arg5[%101, %c0_61, %c0_62] : memref<8x8x128xf32, #tpu.memory_space<vmem>>, vector<1x8x128xf32>
      %103 = vector.shape_cast %102 : vector<1x8x128xf32> to vector<8x128xf32>
      %104 = vector.shape_cast %96 : vector<8x128xf32> to vector<1x8x128xf32>
      tpu.vector_store %arg5[%101, %c0_61, %c0_62], %104 {strides = array<i32>} : memref<8x8x128xf32, #tpu.memory_space<vmem>>, vector<1x8x128xf32>,
      %c0_63 = arith.constant 0 : index
      %c0_64 = arith.constant 0 : index
      %105 = vector.load %arg6[%c0_63, %c0_64] : memref<8x128xf32, #tpu.memory_space<vmem>>, vector<8x128xf32>
      tpu.vector_store %arg6[%c0_63, %c0_64], %100 {strides = array<i32>} : memref<8x128xf32, #tpu.memory_space<vmem>>, vector<8x128xf32>,
      %106 = arith.truncf %96 : vector<8x128xf32> to vector<8x128xbf16>
      %cst_65 = arith.constant dense<0.000000e+00> : vector<8x128xf32>
      %107 = tpu.matmul %106, %0, %cst_65 {dimension_numbers = #tpu.dot_dimension_numbers<[1], [0], [0], [1], [0, 0, 1, 1], [], []>} : vector<8x128xbf16>, vector<128x128xbf16>, vector<8x128xf32> -> vector<8x128xf32>
      %108 = arith.addf %107, %3 : vector<8x128xf32>
      %c0_66 = arith.constant 0 : index
      %c0_67 = arith.constant 0 : index
      %109 = vector.load %arg7[%c0_66, %c0_67] : memref<8x128xf32, #tpu.memory_space<vmem>>, vector<8x128xf32>
      %cst_68 = arith.constant -7.000000e+01 : f32
      %110 = vector.broadcast %cst_68 : f32 to vector<8x128xf32>
      %111 = arith.subf %109, %110 : vector<8x128xf32>
      %cst_69 = arith.constant -2.500000e-03 : f32
      %112 = vector.broadcast %cst_69 : f32 to vector<8x128xf32>
      %113 = arith.mulf %112, %111 : vector<8x128xf32>
      %cst_70 = arith.constant 1.000000e+00 : f32
      %114 = vector.broadcast %cst_70 : f32 to vector<8x128xf32>
      %115 = arith.mulf %114, %108 : vector<8x128xf32>
      %116 = arith.addf %113, %115 : vector<8x128xf32>
      %cst_71 = arith.constant 1.17532682 : f32
      %117 = vector.broadcast %cst_71 : f32 to vector<8x128xf32>
      %118 = arith.mulf %117, %116 : vector<8x128xf32>
      %119 = arith.addf %109, %118 : vector<8x128xf32>
      %cst_72 = arith.constant -5.000000e+01 : f32
      %120 = vector.broadcast %cst_72 : f32 to vector<8x128xf32>
      %121 = arith.subf %109, %120 : vector<8x128xf32>
      %cst_73 = arith.constant 0.000000e+00 : f32
      %122 = vector.broadcast %cst_73 : f32 to vector<8x128xf32>
      %123 = arith.cmpf ogt, %121, %122 : vector<8x128xf32>
      %124 = arith.extui %123 : vector<8x128xi1> to vector<8x128xi32>
      %125 = arith.sitofp %124 : vector<8x128xi32> to vector<8x128xf32>
      %cst_74 = arith.constant -7.000000e+01 : f32
      %126 = vector.broadcast %cst_74 : f32 to vector<8x128xf32>
      %127 = arith.subf %119, %126 : vector<8x128xf32>
      %128 = arith.mulf %125, %127 : vector<8x128xf32>
      %129 = arith.subf %119, %128 : vector<8x128xf32>
      %130 = arith.index_cast %c2_i32 : i32 to index
      %c0_75 = arith.constant 0 : index
      %c0_76 = arith.constant 0 : index
      %131 = vector.load %arg4[%130, %c0_75, %c0_76] : memref<8x8x128xf32, #tpu.memory_space<vmem>>, vector<1x8x128xf32>
      %132 = vector.shape_cast %131 : vector<1x8x128xf32> to vector<8x128xf32>
      %133 = vector.shape_cast %125 : vector<8x128xf32> to vector<1x8x128xf32>
      tpu.vector_store %arg4[%130, %c0_75, %c0_76], %133 {strides = array<i32>} : memref<8x8x128xf32, #tpu.memory_space<vmem>>, vector<1x8x128xf32>,
      %c0_77 = arith.constant 0 : index
      %c0_78 = arith.constant 0 : index
      %134 = vector.load %arg7[%c0_77, %c0_78] : memref<8x128xf32, #tpu.memory_space<vmem>>, vector<8x128xf32>
      tpu.vector_store %arg7[%c0_77, %c0_78], %129 {strides = array<i32>} : memref<8x128xf32, #tpu.memory_space<vmem>>, vector<8x128xf32>,
      %c3_i32 = arith.constant 3 : i32
      %135 = arith.index_cast %c3_i32 : i32 to index
      %c0_79 = arith.constant 0 : index
      %c0_80 = arith.constant 0 : index
      %136 = vector.load %arg1[%135, %c0_79, %c0_80] : memref<8x8x128xf32, #tpu.memory_space<vmem>>, vector<1x8x128xf32>
      %137 = vector.shape_cast %136 : vector<1x8x128xf32> to vector<8x128xf32>
      %c0_81 = arith.constant 0 : index
      %c0_82 = arith.constant 0 : index
      %138 = vector.load %arg6[%c0_81, %c0_82] : memref<8x128xf32, #tpu.memory_space<vmem>>, vector<8x128xf32>
      %cst_83 = arith.constant -7.000000e+01 : f32
      %139 = vector.broadcast %cst_83 : f32 to vector<8x128xf32>
      %140 = arith.subf %138, %139 : vector<8x128xf32>
      %cst_84 = arith.constant -2.500000e-03 : f32
      %141 = vector.broadcast %cst_84 : f32 to vector<8x128xf32>
      %142 = arith.mulf %141, %140 : vector<8x128xf32>
      %cst_85 = arith.constant 1.000000e+00 : f32
      %143 = vector.broadcast %cst_85 : f32 to vector<8x128xf32>
      %144 = arith.mulf %143, %137 : vector<8x128xf32>
      %145 = arith.addf %142, %144 : vector<8x128xf32>
      %cst_86 = arith.constant 1.17532682 : f32
      %146 = vector.broadcast %cst_86 : f32 to vector<8x128xf32>
      %147 = arith.mulf %146, %145 : vector<8x128xf32>
      %148 = arith.addf %138, %147 : vector<8x128xf32>
      %cst_87 = arith.constant -5.000000e+01 : f32
      %149 = vector.broadcast %cst_87 : f32 to vector<8x128xf32>
      %150 = arith.subf %138, %149 : vector<8x128xf32>
      %cst_88 = arith.constant 0.000000e+00 : f32
      %151 = vector.broadcast %cst_88 : f32 to vector<8x128xf32>
      %152 = arith.cmpf ogt, %150, %151 : vector<8x128xf32>
      %153 = arith.extui %152 : vector<8x128xi1> to vector<8x128xi32>
      %154 = arith.sitofp %153 : vector<8x128xi32> to vector<8x128xf32>
      %cst_89 = arith.constant -7.000000e+01 : f32
      %155 = vector.broadcast %cst_89 : f32 to vector<8x128xf32>
      %156 = arith.subf %148, %155 : vector<8x128xf32>
      %157 = arith.mulf %154, %156 : vector<8x128xf32>
      %158 = arith.subf %148, %157 : vector<8x128xf32>
      %159 = arith.index_cast %c3_i32 : i32 to index
      %c0_90 = arith.constant 0 : index
      %c0_91 = arith.constant 0 : index
      %160 = vector.load %arg5[%159, %c0_90, %c0_91] : memref<8x8x128xf32, #tpu.memory_space<vmem>>, vector<1x8x128xf32>
      %161 = vector.shape_cast %160 : vector<1x8x128xf32> to vector<8x128xf32>
      %162 = vector.shape_cast %154 : vector<8x128xf32> to vector<1x8x128xf32>
      tpu.vector_store %arg5[%159, %c0_90, %c0_91], %162 {strides = array<i32>} : memref<8x8x128xf32, #tpu.memory_space<vmem>>, vector<1x8x128xf32>,
      %c0_92 = arith.constant 0 : index
      %c0_93 = arith.constant 0 : index
      %163 = vector.load %arg6[%c0_92, %c0_93] : memref<8x128xf32, #tpu.memory_space<vmem>>, vector<8x128xf32>
      tpu.vector_store %arg6[%c0_92, %c0_93], %158 {strides = array<i32>} : memref<8x128xf32, #tpu.memory_space<vmem>>, vector<8x128xf32>,
      %164 = arith.truncf %154 : vector<8x128xf32> to vector<8x128xbf16>
      %cst_94 = arith.constant dense<0.000000e+00> : vector<8x128xf32>
      %165 = tpu.matmul %164, %0, %cst_94 {dimension_numbers = #tpu.dot_dimension_numbers<[1], [0], [0], [1], [0, 0, 1, 1], [], []>} : vector<8x128xbf16>, vector<128x128xbf16>, vector<8x128xf32> -> vector<8x128xf32>
      %166 = arith.addf %165, %3 : vector<8x128xf32>
      %c0_95 = arith.constant 0 : index
      %c0_96 = arith.constant 0 : index
      %167 = vector.load %arg7[%c0_95, %c0_96] : memref<8x128xf32, #tpu.memory_space<vmem>>, vector<8x128xf32>
      %cst_97 = arith.constant -7.000000e+01 : f32
      %168 = vector.broadcast %cst_97 : f32 to vector<8x128xf32>
      %169 = arith.subf %167, %168 : vector<8x128xf32>
      %cst_98 = arith.constant -2.500000e-03 : f32
      %170 = vector.broadcast %cst_98 : f32 to vector<8x128xf32>
      %171 = arith.mulf %170, %169 : vector<8x128xf32>
      %cst_99 = arith.constant 1.000000e+00 : f32
      %172 = vector.broadcast %cst_99 : f32 to vector<8x128xf32>
      %173 = arith.mulf %172, %166 : vector<8x128xf32>
      %174 = arith.addf %171, %173 : vector<8x128xf32>
      %cst_100 = arith.constant 1.17532682 : f32
      %175 = vector.broadcast %cst_100 : f32 to vector<8x128xf32>
      %176 = arith.mulf %175, %174 : vector<8x128xf32>
      %177 = arith.addf %167, %176 : vector<8x128xf32>
      %cst_101 = arith.constant -5.000000e+01 : f32
      %178 = vector.broadcast %cst_101 : f32 to vector<8x128xf32>
      %179 = arith.subf %167, %178 : vector<8x128xf32>
      %cst_102 = arith.constant 0.000000e+00 : f32
      %180 = vector.broadcast %cst_102 : f32 to vector<8x128xf32>
      %181 = arith.cmpf ogt, %179, %180 : vector<8x128xf32>
      %182 = arith.extui %181 : vector<8x128xi1> to vector<8x128xi32>
      %183 = arith.sitofp %182 : vector<8x128xi32> to vector<8x128xf32>
      %cst_103 = arith.constant -7.000000e+01 : f32
      %184 = vector.broadcast %cst_103 : f32 to vector<8x128xf32>
      %185 = arith.subf %177, %184 : vector<8x128xf32>
      %186 = arith.mulf %183, %185 : vector<8x128xf32>
      %187 = arith.subf %177, %186 : vector<8x128xf32>
      %188 = arith.index_cast %c3_i32 : i32 to index
      %c0_104 = arith.constant 0 : index
      %c0_105 = arith.constant 0 : index
      %189 = vector.load %arg4[%188, %c0_104, %c0_105] : memref<8x8x128xf32, #tpu.memory_space<vmem>>, vector<1x8x128xf32>
      %190 = vector.shape_cast %189 : vector<1x8x128xf32> to vector<8x128xf32>
      %191 = vector.shape_cast %183 : vector<8x128xf32> to vector<1x8x128xf32>
      tpu.vector_store %arg4[%188, %c0_104, %c0_105], %191 {strides = array<i32>} : memref<8x8x128xf32, #tpu.memory_space<vmem>>, vector<1x8x128xf32>,
      %c0_106 = arith.constant 0 : index
      %c0_107 = arith.constant 0 : index
      %192 = vector.load %arg7[%c0_106, %c0_107] : memref<8x128xf32, #tpu.memory_space<vmem>>, vector<8x128xf32>
      tpu.vector_store %arg7[%c0_106, %c0_107], %187 {strides = array<i32>} : memref<8x128xf32, #tpu.memory_space<vmem>>, vector<8x128xf32>,
      %c4_i32 = arith.constant 4 : i32
      %193 = arith.index_cast %c4_i32 : i32 to index
      %c0_108 = arith.constant 0 : index
      %c0_109 = arith.constant 0 : index
      %194 = vector.load %arg1[%193, %c0_108, %c0_109] : memref<8x8x128xf32, #tpu.memory_space<vmem>>, vector<1x8x128xf32>
      %195 = vector.shape_cast %194 : vector<1x8x128xf32> to vector<8x128xf32>
      %c0_110 = arith.constant 0 : index
      %c0_111 = arith.constant 0 : index
      %196 = vector.load %arg6[%c0_110, %c0_111] : memref<8x128xf32, #tpu.memory_space<vmem>>, vector<8x128xf32>
      %cst_112 = arith.constant -7.000000e+01 : f32
      %197 = vector.broadcast %cst_112 : f32 to vector<8x128xf32>
      %198 = arith.subf %196, %197 : vector<8x128xf32>
      %cst_113 = arith.constant -2.500000e-03 : f32
      %199 = vector.broadcast %cst_113 : f32 to vector<8x128xf32>
      %200 = arith.mulf %199, %198 : vector<8x128xf32>
      %cst_114 = arith.constant 1.000000e+00 : f32
      %201 = vector.broadcast %cst_114 : f32 to vector<8x128xf32>
      %202 = arith.mulf %201, %195 : vector<8x128xf32>
      %203 = arith.addf %200, %202 : vector<8x128xf32>
      %cst_115 = arith.constant 1.17532682 : f32
      %204 = vector.broadcast %cst_115 : f32 to vector<8x128xf32>
      %205 = arith.mulf %204, %203 : vector<8x128xf32>
      %206 = arith.addf %196, %205 : vector<8x128xf32>
      %cst_116 = arith.constant -5.000000e+01 : f32
      %207 = vector.broadcast %cst_116 : f32 to vector<8x128xf32>
      %208 = arith.subf %196, %207 : vector<8x128xf32>
      %cst_117 = arith.constant 0.000000e+00 : f32
      %209 = vector.broadcast %cst_117 : f32 to vector<8x128xf32>
      %210 = arith.cmpf ogt, %208, %209 : vector<8x128xf32>
      %211 = arith.extui %210 : vector<8x128xi1> to vector<8x128xi32>
      %212 = arith.sitofp %211 : vector<8x128xi32> to vector<8x128xf32>
      %cst_118 = arith.constant -7.000000e+01 : f32
      %213 = vector.broadcast %cst_118 : f32 to vector<8x128xf32>
      %214 = arith.subf %206, %213 : vector<8x128xf32>
      %215 = arith.mulf %212, %214 : vector<8x128xf32>
      %216 = arith.subf %206, %215 : vector<8x128xf32>
      %217 = arith.index_cast %c4_i32 : i32 to index
      %c0_119 = arith.constant 0 : index
      %c0_120 = arith.constant 0 : index
      %218 = vector.load %arg5[%217, %c0_119, %c0_120] : memref<8x8x128xf32, #tpu.memory_space<vmem>>, vector<1x8x128xf32>
      %219 = vector.shape_cast %218 : vector<1x8x128xf32> to vector<8x128xf32>
      %220 = vector.shape_cast %212 : vector<8x128xf32> to vector<1x8x128xf32>
      tpu.vector_store %arg5[%217, %c0_119, %c0_120], %220 {strides = array<i32>} : memref<8x8x128xf32, #tpu.memory_space<vmem>>, vector<1x8x128xf32>,
      %c0_121 = arith.constant 0 : index
      %c0_122 = arith.constant 0 : index
      %221 = vector.load %arg6[%c0_121, %c0_122] : memref<8x128xf32, #tpu.memory_space<vmem>>, vector<8x128xf32>
      tpu.vector_store %arg6[%c0_121, %c0_122], %216 {strides = array<i32>} : memref<8x128xf32, #tpu.memory_space<vmem>>, vector<8x128xf32>,
      %222 = arith.truncf %212 : vector<8x128xf32> to vector<8x128xbf16>
      %cst_123 = arith.constant dense<0.000000e+00> : vector<8x128xf32>
      %223 = tpu.matmul %222, %0, %cst_123 {dimension_numbers = #tpu.dot_dimension_numbers<[1], [0], [0], [1], [0, 0, 1, 1], [], []>} : vector<8x128xbf16>, vector<128x128xbf16>, vector<8x128xf32> -> vector<8x128xf32>
      %224 = arith.addf %223, %3 : vector<8x128xf32>
      %c0_124 = arith.constant 0 : index
      %c0_125 = arith.constant 0 : index
      %225 = vector.load %arg7[%c0_124, %c0_125] : memref<8x128xf32, #tpu.memory_space<vmem>>, vector<8x128xf32>
      %cst_126 = arith.constant -7.000000e+01 : f32
      %226 = vector.broadcast %cst_126 : f32 to vector<8x128xf32>
      %227 = arith.subf %225, %226 : vector<8x128xf32>
      %cst_127 = arith.constant -2.500000e-03 : f32
      %228 = vector.broadcast %cst_127 : f32 to vector<8x128xf32>
      %229 = arith.mulf %228, %227 : vector<8x128xf32>
      %cst_128 = arith.constant 1.000000e+00 : f32
      %230 = vector.broadcast %cst_128 : f32 to vector<8x128xf32>
      %231 = arith.mulf %230, %224 : vector<8x128xf32>
      %232 = arith.addf %229, %231 : vector<8x128xf32>
      %cst_129 = arith.constant 1.17532682 : f32
      %233 = vector.broadcast %cst_129 : f32 to vector<8x128xf32>
      %234 = arith.mulf %233, %232 : vector<8x128xf32>
      %235 = arith.addf %225, %234 : vector<8x128xf32>
      %cst_130 = arith.constant -5.000000e+01 : f32
      %236 = vector.broadcast %cst_130 : f32 to vector<8x128xf32>
      %237 = arith.subf %225, %236 : vector<8x128xf32>
      %cst_131 = arith.constant 0.000000e+00 : f32
      %238 = vector.broadcast %cst_131 : f32 to vector<8x128xf32>
      %239 = arith.cmpf ogt, %237, %238 : vector<8x128xf32>
      %240 = arith.extui %239 : vector<8x128xi1> to vector<8x128xi32>
      %241 = arith.sitofp %240 : vector<8x128xi32> to vector<8x128xf32>
      %cst_132 = arith.constant -7.000000e+01 : f32
      %242 = vector.broadcast %cst_132 : f32 to vector<8x128xf32>
      %243 = arith.subf %235, %242 : vector<8x128xf32>
      %244 = arith.mulf %241, %243 : vector<8x128xf32>
      %245 = arith.subf %235, %244 : vector<8x128xf32>
      %246 = arith.index_cast %c4_i32 : i32 to index
      %c0_133 = arith.constant 0 : index
      %c0_134 = arith.constant 0 : index
      %247 = vector.load %arg4[%246, %c0_133, %c0_134] : memref<8x8x128xf32, #tpu.memory_space<vmem>>, vector<1x8x128xf32>
      %248 = vector.shape_cast %247 : vector<1x8x128xf32> to vector<8x128xf32>
      %249 = vector.shape_cast %241 : vector<8x128xf32> to vector<1x8x128xf32>
      tpu.vector_store %arg4[%246, %c0_133, %c0_134], %249 {strides = array<i32>} : memref<8x8x128xf32, #tpu.memory_space<vmem>>, vector<1x8x128xf32>,
      %c0_135 = arith.constant 0 : index
      %c0_136 = arith.constant 0 : index
      %250 = vector.load %arg7[%c0_135, %c0_136] : memref<8x128xf32, #tpu.memory_space<vmem>>, vector<8x128xf32>
      tpu.vector_store %arg7[%c0_135, %c0_136], %245 {strides = array<i32>} : memref<8x128xf32, #tpu.memory_space<vmem>>, vector<8x128xf32>,
      %c5_i32 = arith.constant 5 : i32
      %251 = arith.index_cast %c5_i32 : i32 to index
      %c0_137 = arith.constant 0 : index
      %c0_138 = arith.constant 0 : index
      %252 = vector.load %arg1[%251, %c0_137, %c0_138] : memref<8x8x128xf32, #tpu.memory_space<vmem>>, vector<1x8x128xf32>
      %253 = vector.shape_cast %252 : vector<1x8x128xf32> to vector<8x128xf32>
      %c0_139 = arith.constant 0 : index
      %c0_140 = arith.constant 0 : index
      %254 = vector.load %arg6[%c0_139, %c0_140] : memref<8x128xf32, #tpu.memory_space<vmem>>, vector<8x128xf32>
      %cst_141 = arith.constant -7.000000e+01 : f32
      %255 = vector.broadcast %cst_141 : f32 to vector<8x128xf32>
      %256 = arith.subf %254, %255 : vector<8x128xf32>
      %cst_142 = arith.constant -2.500000e-03 : f32
      %257 = vector.broadcast %cst_142 : f32 to vector<8x128xf32>
      %258 = arith.mulf %257, %256 : vector<8x128xf32>
      %cst_143 = arith.constant 1.000000e+00 : f32
      %259 = vector.broadcast %cst_143 : f32 to vector<8x128xf32>
      %260 = arith.mulf %259, %253 : vector<8x128xf32>
      %261 = arith.addf %258, %260 : vector<8x128xf32>
      %cst_144 = arith.constant 1.17532682 : f32
      %262 = vector.broadcast %cst_144 : f32 to vector<8x128xf32>
      %263 = arith.mulf %262, %261 : vector<8x128xf32>
      %264 = arith.addf %254, %263 : vector<8x128xf32>
      %cst_145 = arith.constant -5.000000e+01 : f32
      %265 = vector.broadcast %cst_145 : f32 to vector<8x128xf32>
      %266 = arith.subf %254, %265 : vector<8x128xf32>
      %cst_146 = arith.constant 0.000000e+00 : f32
      %267 = vector.broadcast %cst_146 : f32 to vector<8x128xf32>
      %268 = arith.cmpf ogt, %266, %267 : vector<8x128xf32>
      %269 = arith.extui %268 : vector<8x128xi1> to vector<8x128xi32>
      %270 = arith.sitofp %269 : vector<8x128xi32> to vector<8x128xf32>
      %cst_147 = arith.constant -7.000000e+01 : f32
      %271 = vector.broadcast %cst_147 : f32 to vector<8x128xf32>
      %272 = arith.subf %264, %271 : vector<8x128xf32>
      %273 = arith.mulf %270, %272 : vector<8x128xf32>
      %274 = arith.subf %264, %273 : vector<8x128xf32>
      %275 = arith.index_cast %c5_i32 : i32 to index
      %c0_148 = arith.constant 0 : index
      %c0_149 = arith.constant 0 : index
      %276 = vector.load %arg5[%275, %c0_148, %c0_149] : memref<8x8x128xf32, #tpu.memory_space<vmem>>, vector<1x8x128xf32>
      %277 = vector.shape_cast %276 : vector<1x8x128xf32> to vector<8x128xf32>
      %278 = vector.shape_cast %270 : vector<8x128xf32> to vector<1x8x128xf32>
      tpu.vector_store %arg5[%275, %c0_148, %c0_149], %278 {strides = array<i32>} : memref<8x8x128xf32, #tpu.memory_space<vmem>>, vector<1x8x128xf32>,
      %c0_150 = arith.constant 0 : index
      %c0_151 = arith.constant 0 : index
      %279 = vector.load %arg6[%c0_150, %c0_151] : memref<8x128xf32, #tpu.memory_space<vmem>>, vector<8x128xf32>
      tpu.vector_store %arg6[%c0_150, %c0_151], %274 {strides = array<i32>} : memref<8x128xf32, #tpu.memory_space<vmem>>, vector<8x128xf32>,
      %280 = arith.truncf %270 : vector<8x128xf32> to vector<8x128xbf16>
      %cst_152 = arith.constant dense<0.000000e+00> : vector<8x128xf32>
      %281 = tpu.matmul %280, %0, %cst_152 {dimension_numbers = #tpu.dot_dimension_numbers<[1], [0], [0], [1], [0, 0, 1, 1], [], []>} : vector<8x128xbf16>, vector<128x128xbf16>, vector<8x128xf32> -> vector<8x128xf32>
      %282 = arith.addf %281, %3 : vector<8x128xf32>
      %c0_153 = arith.constant 0 : index
      %c0_154 = arith.constant 0 : index
      %283 = vector.load %arg7[%c0_153, %c0_154] : memref<8x128xf32, #tpu.memory_space<vmem>>, vector<8x128xf32>
      %cst_155 = arith.constant -7.000000e+01 : f32
      %284 = vector.broadcast %cst_155 : f32 to vector<8x128xf32>
      %285 = arith.subf %283, %284 : vector<8x128xf32>
      %cst_156 = arith.constant -2.500000e-03 : f32
      %286 = vector.broadcast %cst_156 : f32 to vector<8x128xf32>
      %287 = arith.mulf %286, %285 : vector<8x128xf32>
      %cst_157 = arith.constant 1.000000e+00 : f32
      %288 = vector.broadcast %cst_157 : f32 to vector<8x128xf32>
      %289 = arith.mulf %288, %282 : vector<8x128xf32>
      %290 = arith.addf %287, %289 : vector<8x128xf32>
      %cst_158 = arith.constant 1.17532682 : f32
      %291 = vector.broadcast %cst_158 : f32 to vector<8x128xf32>
      %292 = arith.mulf %291, %290 : vector<8x128xf32>
      %293 = arith.addf %283, %292 : vector<8x128xf32>
      %cst_159 = arith.constant -5.000000e+01 : f32
      %294 = vector.broadcast %cst_159 : f32 to vector<8x128xf32>
      %295 = arith.subf %283, %294 : vector<8x128xf32>
      %cst_160 = arith.constant 0.000000e+00 : f32
      %296 = vector.broadcast %cst_160 : f32 to vector<8x128xf32>
      %297 = arith.cmpf ogt, %295, %296 : vector<8x128xf32>
      %298 = arith.extui %297 : vector<8x128xi1> to vector<8x128xi32>
      %299 = arith.sitofp %298 : vector<8x128xi32> to vector<8x128xf32>
      %cst_161 = arith.constant -7.000000e+01 : f32
      %300 = vector.broadcast %cst_161 : f32 to vector<8x128xf32>
      %301 = arith.subf %293, %300 : vector<8x128xf32>
      %302 = arith.mulf %299, %301 : vector<8x128xf32>
      %303 = arith.subf %293, %302 : vector<8x128xf32>
      %304 = arith.index_cast %c5_i32 : i32 to index
      %c0_162 = arith.constant 0 : index
      %c0_163 = arith.constant 0 : index
      %305 = vector.load %arg4[%304, %c0_162, %c0_163] : memref<8x8x128xf32, #tpu.memory_space<vmem>>, vector<1x8x128xf32>
      %306 = vector.shape_cast %305 : vector<1x8x128xf32> to vector<8x128xf32>
      %307 = vector.shape_cast %299 : vector<8x128xf32> to vector<1x8x128xf32>
      tpu.vector_store %arg4[%304, %c0_162, %c0_163], %307 {strides = array<i32>} : memref<8x8x128xf32, #tpu.memory_space<vmem>>, vector<1x8x128xf32>,
      %c0_164 = arith.constant 0 : index
      %c0_165 = arith.constant 0 : index
      %308 = vector.load %arg7[%c0_164, %c0_165] : memref<8x128xf32, #tpu.memory_space<vmem>>, vector<8x128xf32>
      tpu.vector_store %arg7[%c0_164, %c0_165], %303 {strides = array<i32>} : memref<8x128xf32, #tpu.memory_space<vmem>>, vector<8x128xf32>,
      %c6_i32 = arith.constant 6 : i32
      %309 = arith.index_cast %c6_i32 : i32 to index
      %c0_166 = arith.constant 0 : index
      %c0_167 = arith.constant 0 : index
      %310 = vector.load %arg1[%309, %c0_166, %c0_167] : memref<8x8x128xf32, #tpu.memory_space<vmem>>, vector<1x8x128xf32>
      %311 = vector.shape_cast %310 : vector<1x8x128xf32> to vector<8x128xf32>
      %c0_168 = arith.constant 0 : index
      %c0_169 = arith.constant 0 : index
      %312 = vector.load %arg6[%c0_168, %c0_169] : memref<8x128xf32, #tpu.memory_space<vmem>>, vector<8x128xf32>
      %cst_170 = arith.constant -7.000000e+01 : f32
      %313 = vector.broadcast %cst_170 : f32 to vector<8x128xf32>
      %314 = arith.subf %312, %313 : vector<8x128xf32>
      %cst_171 = arith.constant -2.500000e-03 : f32
      %315 = vector.broadcast %cst_171 : f32 to vector<8x128xf32>
      %316 = arith.mulf %315, %314 : vector<8x128xf32>
      %cst_172 = arith.constant 1.000000e+00 : f32
      %317 = vector.broadcast %cst_172 : f32 to vector<8x128xf32>
      %318 = arith.mulf %317, %311 : vector<8x128xf32>
      %319 = arith.addf %316, %318 : vector<8x128xf32>
      %cst_173 = arith.constant 1.17532682 : f32
      %320 = vector.broadcast %cst_173 : f32 to vector<8x128xf32>
      %321 = arith.mulf %320, %319 : vector<8x128xf32>
      %322 = arith.addf %312, %321 : vector<8x128xf32>
      %cst_174 = arith.constant -5.000000e+01 : f32
      %323 = vector.broadcast %cst_174 : f32 to vector<8x128xf32>
      %324 = arith.subf %312, %323 : vector<8x128xf32>
      %cst_175 = arith.constant 0.000000e+00 : f32
      %325 = vector.broadcast %cst_175 : f32 to vector<8x128xf32>
      %326 = arith.cmpf ogt, %324, %325 : vector<8x128xf32>
      %327 = arith.extui %326 : vector<8x128xi1> to vector<8x128xi32>
      %328 = arith.sitofp %327 : vector<8x128xi32> to vector<8x128xf32>
      %cst_176 = arith.constant -7.000000e+01 : f32
      %329 = vector.broadcast %cst_176 : f32 to vector<8x128xf32>
      %330 = arith.subf %322, %329 : vector<8x128xf32>
      %331 = arith.mulf %328, %330 : vector<8x128xf32>
      %332 = arith.subf %322, %331 : vector<8x128xf32>
      %333 = arith.index_cast %c6_i32 : i32 to index
      %c0_177 = arith.constant 0 : index
      %c0_178 = arith.constant 0 : index
      %334 = vector.load %arg5[%333, %c0_177, %c0_178] : memref<8x8x128xf32, #tpu.memory_space<vmem>>, vector<1x8x128xf32>
      %335 = vector.shape_cast %334 : vector<1x8x128xf32> to vector<8x128xf32>
      %336 = vector.shape_cast %328 : vector<8x128xf32> to vector<1x8x128xf32>
      tpu.vector_store %arg5[%333, %c0_177, %c0_178], %336 {strides = array<i32>} : memref<8x8x128xf32, #tpu.memory_space<vmem>>, vector<1x8x128xf32>,
      %c0_179 = arith.constant 0 : index
      %c0_180 = arith.constant 0 : index
      %337 = vector.load %arg6[%c0_179, %c0_180] : memref<8x128xf32, #tpu.memory_space<vmem>>, vector<8x128xf32>
      tpu.vector_store %arg6[%c0_179, %c0_180], %332 {strides = array<i32>} : memref<8x128xf32, #tpu.memory_space<vmem>>, vector<8x128xf32>,
      %338 = arith.truncf %328 : vector<8x128xf32> to vector<8x128xbf16>
      %cst_181 = arith.constant dense<0.000000e+00> : vector<8x128xf32>
      %339 = tpu.matmul %338, %0, %cst_181 {dimension_numbers = #tpu.dot_dimension_numbers<[1], [0], [0], [1], [0, 0, 1, 1], [], []>} : vector<8x128xbf16>, vector<128x128xbf16>, vector<8x128xf32> -> vector<8x128xf32>
      %340 = arith.addf %339, %3 : vector<8x128xf32>
      %c0_182 = arith.constant 0 : index
      %c0_183 = arith.constant 0 : index
      %341 = vector.load %arg7[%c0_182, %c0_183] : memref<8x128xf32, #tpu.memory_space<vmem>>, vector<8x128xf32>
      %cst_184 = arith.constant -7.000000e+01 : f32
      %342 = vector.broadcast %cst_184 : f32 to vector<8x128xf32>
      %343 = arith.subf %341, %342 : vector<8x128xf32>
      %cst_185 = arith.constant -2.500000e-03 : f32
      %344 = vector.broadcast %cst_185 : f32 to vector<8x128xf32>
      %345 = arith.mulf %344, %343 : vector<8x128xf32>
      %cst_186 = arith.constant 1.000000e+00 : f32
      %346 = vector.broadcast %cst_186 : f32 to vector<8x128xf32>
      %347 = arith.mulf %346, %340 : vector<8x128xf32>
      %348 = arith.addf %345, %347 : vector<8x128xf32>
      %cst_187 = arith.constant 1.17532682 : f32
      %349 = vector.broadcast %cst_187 : f32 to vector<8x128xf32>
      %350 = arith.mulf %349, %348 : vector<8x128xf32>
      %351 = arith.addf %341, %350 : vector<8x128xf32>
      %cst_188 = arith.constant -5.000000e+01 : f32
      %352 = vector.broadcast %cst_188 : f32 to vector<8x128xf32>
      %353 = arith.subf %341, %352 : vector<8x128xf32>
      %cst_189 = arith.constant 0.000000e+00 : f32
      %354 = vector.broadcast %cst_189 : f32 to vector<8x128xf32>
      %355 = arith.cmpf ogt, %353, %354 : vector<8x128xf32>
      %356 = arith.extui %355 : vector<8x128xi1> to vector<8x128xi32>
      %357 = arith.sitofp %356 : vector<8x128xi32> to vector<8x128xf32>
      %cst_190 = arith.constant -7.000000e+01 : f32
      %358 = vector.broadcast %cst_190 : f32 to vector<8x128xf32>
      %359 = arith.subf %351, %358 : vector<8x128xf32>
      %360 = arith.mulf %357, %359 : vector<8x128xf32>
      %361 = arith.subf %351, %360 : vector<8x128xf32>
      %362 = arith.index_cast %c6_i32 : i32 to index
      %c0_191 = arith.constant 0 : index
      %c0_192 = arith.constant 0 : index
      %363 = vector.load %arg4[%362, %c0_191, %c0_192] : memref<8x8x128xf32, #tpu.memory_space<vmem>>, vector<1x8x128xf32>
      %364 = vector.shape_cast %363 : vector<1x8x128xf32> to vector<8x128xf32>
      %365 = vector.shape_cast %357 : vector<8x128xf32> to vector<1x8x128xf32>
      tpu.vector_store %arg4[%362, %c0_191, %c0_192], %365 {strides = array<i32>} : memref<8x8x128xf32, #tpu.memory_space<vmem>>, vector<1x8x128xf32>,
      %c0_193 = arith.constant 0 : index
      %c0_194 = arith.constant 0 : index
      %366 = vector.load %arg7[%c0_193, %c0_194] : memref<8x128xf32, #tpu.memory_space<vmem>>, vector<8x128xf32>
      tpu.vector_store %arg7[%c0_193, %c0_194], %361 {strides = array<i32>} : memref<8x128xf32, #tpu.memory_space<vmem>>, vector<8x128xf32>,
      %c7_i32 = arith.constant 7 : i32
      %367 = arith.index_cast %c7_i32 : i32 to index
      %c0_195 = arith.constant 0 : index
      %c0_196 = arith.constant 0 : index
      %368 = vector.load %arg1[%367, %c0_195, %c0_196] : memref<8x8x128xf32, #tpu.memory_space<vmem>>, vector<1x8x128xf32>
      %369 = vector.shape_cast %368 : vector<1x8x128xf32> to vector<8x128xf32>
      %c0_197 = arith.constant 0 : index
      %c0_198 = arith.constant 0 : index
      %370 = vector.load %arg6[%c0_197, %c0_198] : memref<8x128xf32, #tpu.memory_space<vmem>>, vector<8x128xf32>
      %cst_199 = arith.constant -7.000000e+01 : f32
      %371 = vector.broadcast %cst_199 : f32 to vector<8x128xf32>
      %372 = arith.subf %370, %371 : vector<8x128xf32>
      %cst_200 = arith.constant -2.500000e-03 : f32
      %373 = vector.broadcast %cst_200 : f32 to vector<8x128xf32>
      %374 = arith.mulf %373, %372 : vector<8x128xf32>
      %cst_201 = arith.constant 1.000000e+00 : f32
      %375 = vector.broadcast %cst_201 : f32 to vector<8x128xf32>
      %376 = arith.mulf %375, %369 : vector<8x128xf32>
      %377 = arith.addf %374, %376 : vector<8x128xf32>
      %cst_202 = arith.constant 1.17532682 : f32
      %378 = vector.broadcast %cst_202 : f32 to vector<8x128xf32>
      %379 = arith.mulf %378, %377 : vector<8x128xf32>
      %380 = arith.addf %370, %379 : vector<8x128xf32>
      %cst_203 = arith.constant -5.000000e+01 : f32
      %381 = vector.broadcast %cst_203 : f32 to vector<8x128xf32>
      %382 = arith.subf %370, %381 : vector<8x128xf32>
      %cst_204 = arith.constant 0.000000e+00 : f32
      %383 = vector.broadcast %cst_204 : f32 to vector<8x128xf32>
      %384 = arith.cmpf ogt, %382, %383 : vector<8x128xf32>
      %385 = arith.extui %384 : vector<8x128xi1> to vector<8x128xi32>
      %386 = arith.sitofp %385 : vector<8x128xi32> to vector<8x128xf32>
      %cst_205 = arith.constant -7.000000e+01 : f32
      %387 = vector.broadcast %cst_205 : f32 to vector<8x128xf32>
      %388 = arith.subf %380, %387 : vector<8x128xf32>
      %389 = arith.mulf %386, %388 : vector<8x128xf32>
      %390 = arith.subf %380, %389 : vector<8x128xf32>
      %391 = arith.index_cast %c7_i32 : i32 to index
      %c0_206 = arith.constant 0 : index
      %c0_207 = arith.constant 0 : index
      %392 = vector.load %arg5[%391, %c0_206, %c0_207] : memref<8x8x128xf32, #tpu.memory_space<vmem>>, vector<1x8x128xf32>
      %393 = vector.shape_cast %392 : vector<1x8x128xf32> to vector<8x128xf32>
      %394 = vector.shape_cast %386 : vector<8x128xf32> to vector<1x8x128xf32>
      tpu.vector_store %arg5[%391, %c0_206, %c0_207], %394 {strides = array<i32>} : memref<8x8x128xf32, #tpu.memory_space<vmem>>, vector<1x8x128xf32>,
      %c0_208 = arith.constant 0 : index
      %c0_209 = arith.constant 0 : index
      %395 = vector.load %arg6[%c0_208, %c0_209] : memref<8x128xf32, #tpu.memory_space<vmem>>, vector<8x128xf32>
      tpu.vector_store %arg6[%c0_208, %c0_209], %390 {strides = array<i32>} : memref<8x128xf32, #tpu.memory_space<vmem>>, vector<8x128xf32>,
      %396 = arith.truncf %386 : vector<8x128xf32> to vector<8x128xbf16>
      %cst_210 = arith.constant dense<0.000000e+00> : vector<8x128xf32>
      %397 = tpu.matmul %396, %0, %cst_210 {dimension_numbers = #tpu.dot_dimension_numbers<[1], [0], [0], [1], [0, 0, 1, 1], [], []>} : vector<8x128xbf16>, vector<128x128xbf16>, vector<8x128xf32> -> vector<8x128xf32>
      %398 = arith.addf %397, %3 : vector<8x128xf32>
      %c0_211 = arith.constant 0 : index
      %c0_212 = arith.constant 0 : index
      %399 = vector.load %arg7[%c0_211, %c0_212] : memref<8x128xf32, #tpu.memory_space<vmem>>, vector<8x128xf32>
      %cst_213 = arith.constant -7.000000e+01 : f32
      %400 = vector.broadcast %cst_213 : f32 to vector<8x128xf32>
      %401 = arith.subf %399, %400 : vector<8x128xf32>
      %cst_214 = arith.constant -2.500000e-03 : f32
      %402 = vector.broadcast %cst_214 : f32 to vector<8x128xf32>
      %403 = arith.mulf %402, %401 : vector<8x128xf32>
      %cst_215 = arith.constant 1.000000e+00 : f32
      %404 = vector.broadcast %cst_215 : f32 to vector<8x128xf32>
      %405 = arith.mulf %404, %398 : vector<8x128xf32>
      %406 = arith.addf %403, %405 : vector<8x128xf32>
      %cst_216 = arith.constant 1.17532682 : f32
      %407 = vector.broadcast %cst_216 : f32 to vector<8x128xf32>
      %408 = arith.mulf %407, %406 : vector<8x128xf32>
      %409 = arith.addf %399, %408 : vector<8x128xf32>
      %cst_217 = arith.constant -5.000000e+01 : f32
      %410 = vector.broadcast %cst_217 : f32 to vector<8x128xf32>
      %411 = arith.subf %399, %410 : vector<8x128xf32>
      %cst_218 = arith.constant 0.000000e+00 : f32
      %412 = vector.broadcast %cst_218 : f32 to vector<8x128xf32>
      %413 = arith.cmpf ogt, %411, %412 : vector<8x128xf32>
      %414 = arith.extui %413 : vector<8x128xi1> to vector<8x128xi32>
      %415 = arith.sitofp %414 : vector<8x128xi32> to vector<8x128xf32>
      %cst_219 = arith.constant -7.000000e+01 : f32
      %416 = vector.broadcast %cst_219 : f32 to vector<8x128xf32>
      %417 = arith.subf %409, %416 : vector<8x128xf32>
      %418 = arith.mulf %415, %417 : vector<8x128xf32>
      %419 = arith.subf %409, %418 : vector<8x128xf32>
      %420 = arith.index_cast %c7_i32 : i32 to index
      %c0_220 = arith.constant 0 : index
      %c0_221 = arith.constant 0 : index
      %421 = vector.load %arg4[%420, %c0_220, %c0_221] : memref<8x8x128xf32, #tpu.memory_space<vmem>>, vector<1x8x128xf32>
      %422 = vector.shape_cast %421 : vector<1x8x128xf32> to vector<8x128xf32>
      %423 = vector.shape_cast %415 : vector<8x128xf32> to vector<1x8x128xf32>
      tpu.vector_store %arg4[%420, %c0_220, %c0_221], %423 {strides = array<i32>} : memref<8x8x128xf32, #tpu.memory_space<vmem>>, vector<1x8x128xf32>,
      %c0_222 = arith.constant 0 : index
      %c0_223 = arith.constant 0 : index
      %424 = vector.load %arg7[%c0_222, %c0_223] : memref<8x128xf32, #tpu.memory_space<vmem>>, vector<8x128xf32>
      tpu.vector_store %arg7[%c0_222, %c0_223], %419 {strides = array<i32>} : memref<8x128xf32, #tpu.memory_space<vmem>>, vector<8x128xf32>,
      %c6_i32_224 = arith.constant 6 : i32
    } else {
    }
    %c0_i32_4 = arith.constant 0 : i32
    %7 = arith.cmpi sgt, %arg0, %c0_i32_4 : i32
    %8 = arith.extui %7 : i1 to i32
    %c0_i32_5 = arith.constant 0 : i32
    %9 = arith.cmpi ne, %8, %c0_i32_5 : i32
    scf.if %9 {
      %c0_i32_6 = arith.constant 0 : i32
      %10 = arith.index_cast %c0_i32_6 : i32 to index
      %c0_7 = arith.constant 0 : index
      %c0_8 = arith.constant 0 : index
      %11 = vector.load %arg1[%10, %c0_7, %c0_8] : memref<8x8x128xf32, #tpu.memory_space<vmem>>, vector<1x8x128xf32>
      %12 = vector.shape_cast %11 : vector<1x8x128xf32> to vector<8x128xf32>
      %c0_9 = arith.constant 0 : index
      %c0_10 = arith.constant 0 : index
      %13 = vector.load %arg6[%c0_9, %c0_10] : memref<8x128xf32, #tpu.memory_space<vmem>>, vector<8x128xf32>
      %cst = arith.constant -7.000000e+01 : f32
      %14 = vector.broadcast %cst : f32 to vector<8x128xf32>
      %15 = arith.subf %13, %14 : vector<8x128xf32>
      %cst_11 = arith.constant -2.500000e-03 : f32
      %16 = vector.broadcast %cst_11 : f32 to vector<8x128xf32>
      %17 = arith.mulf %16, %15 : vector<8x128xf32>
      %cst_12 = arith.constant 1.000000e+00 : f32
      %18 = vector.broadcast %cst_12 : f32 to vector<8x128xf32>
      %19 = arith.mulf %18, %12 : vector<8x128xf32>
      %20 = arith.addf %17, %19 : vector<8x128xf32>
      %cst_13 = arith.constant 1.17532682 : f32
      %21 = vector.broadcast %cst_13 : f32 to vector<8x128xf32>
      %22 = arith.mulf %21, %20 : vector<8x128xf32>
      %23 = arith.addf %13, %22 : vector<8x128xf32>
      %cst_14 = arith.constant -5.000000e+01 : f32
      %24 = vector.broadcast %cst_14 : f32 to vector<8x128xf32>
      %25 = arith.subf %13, %24 : vector<8x128xf32>
      %cst_15 = arith.constant 0.000000e+00 : f32
      %26 = vector.broadcast %cst_15 : f32 to vector<8x128xf32>
      %27 = arith.cmpf ogt, %25, %26 : vector<8x128xf32>
      %28 = arith.extui %27 : vector<8x128xi1> to vector<8x128xi32>
      %29 = arith.sitofp %28 : vector<8x128xi32> to vector<8x128xf32>
      %cst_16 = arith.constant -7.000000e+01 : f32
      %30 = vector.broadcast %cst_16 : f32 to vector<8x128xf32>
      %31 = arith.subf %23, %30 : vector<8x128xf32>
      %32 = arith.mulf %29, %31 : vector<8x128xf32>
      %33 = arith.subf %23, %32 : vector<8x128xf32>
      %34 = arith.index_cast %c0_i32_6 : i32 to index
      %c0_17 = arith.constant 0 : index
      %c0_18 = arith.constant 0 : index
      %35 = vector.load %arg5[%34, %c0_17, %c0_18] : memref<8x8x128xf32, #tpu.memory_space<vmem>>, vector<1x8x128xf32>
      %36 = vector.shape_cast %35 : vector<1x8x128xf32> to vector<8x128xf32>
      %37 = vector.shape_cast %29 : vector<8x128xf32> to vector<1x8x128xf32>
      tpu.vector_store %arg5[%34, %c0_17, %c0_18], %37 {strides = array<i32>} : memref<8x8x128xf32, #tpu.memory_space<vmem>>, vector<1x8x128xf32>,
      %c0_19 = arith.constant 0 : index
      %c0_20 = arith.constant 0 : index
      %38 = vector.load %arg6[%c0_19, %c0_20] : memref<8x128xf32, #tpu.memory_space<vmem>>, vector<8x128xf32>
      tpu.vector_store %arg6[%c0_19, %c0_20], %33 {strides = array<i32>} : memref<8x128xf32, #tpu.memory_space<vmem>>, vector<8x128xf32>,
      %39 = arith.truncf %29 : vector<8x128xf32> to vector<8x128xbf16>
      %cst_21 = arith.constant dense<0.000000e+00> : vector<8x128xf32>
      %40 = tpu.matmul %39, %0, %cst_21 {dimension_numbers = #tpu.dot_dimension_numbers<[1], [0], [0], [1], [0, 0, 1, 1], [], []>} : vector<8x128xbf16>, vector<128x128xbf16>, vector<8x128xf32> -> vector<8x128xf32>
      %41 = arith.addf %40, %3 : vector<8x128xf32>
      %c0_22 = arith.constant 0 : index
      %c0_23 = arith.constant 0 : index
      %42 = vector.load %arg7[%c0_22, %c0_23] : memref<8x128xf32, #tpu.memory_space<vmem>>, vector<8x128xf32>
      %cst_24 = arith.constant -7.000000e+01 : f32
      %43 = vector.broadcast %cst_24 : f32 to vector<8x128xf32>
      %44 = arith.subf %42, %43 : vector<8x128xf32>
      %cst_25 = arith.constant -2.500000e-03 : f32
      %45 = vector.broadcast %cst_25 : f32 to vector<8x128xf32>
      %46 = arith.mulf %45, %44 : vector<8x128xf32>
      %cst_26 = arith.constant 1.000000e+00 : f32
      %47 = vector.broadcast %cst_26 : f32 to vector<8x128xf32>
      %48 = arith.mulf %47, %41 : vector<8x128xf32>
      %49 = arith.addf %46, %48 : vector<8x128xf32>
      %cst_27 = arith.constant 1.17532682 : f32
      %50 = vector.broadcast %cst_27 : f32 to vector<8x128xf32>
      %51 = arith.mulf %50, %49 : vector<8x128xf32>
      %52 = arith.addf %42, %51 : vector<8x128xf32>
      %cst_28 = arith.constant -5.000000e+01 : f32
      %53 = vector.broadcast %cst_28 : f32 to vector<8x128xf32>
      %54 = arith.subf %42, %53 : vector<8x128xf32>
      %cst_29 = arith.constant 0.000000e+00 : f32
      %55 = vector.broadcast %cst_29 : f32 to vector<8x128xf32>
      %56 = arith.cmpf ogt, %54, %55 : vector<8x128xf32>
      %57 = arith.extui %56 : vector<8x128xi1> to vector<8x128xi32>
      %58 = arith.sitofp %57 : vector<8x128xi32> to vector<8x128xf32>
      %cst_30 = arith.constant -7.000000e+01 : f32
      %59 = vector.broadcast %cst_30 : f32 to vector<8x128xf32>
      %60 = arith.subf %52, %59 : vector<8x128xf32>
      %61 = arith.mulf %58, %60 : vector<8x128xf32>
      %62 = arith.subf %52, %61 : vector<8x128xf32>
      %63 = arith.index_cast %c0_i32_6 : i32 to index
      %c0_31 = arith.constant 0 : index
      %c0_32 = arith.constant 0 : index
      %64 = vector.load %arg4[%63, %c0_31, %c0_32] : memref<8x8x128xf32, #tpu.memory_space<vmem>>, vector<1x8x128xf32>
      %65 = vector.shape_cast %64 : vector<1x8x128xf32> to vector<8x128xf32>
      %66 = vector.shape_cast %58 : vector<8x128xf32> to vector<1x8x128xf32>
      tpu.vector_store %arg4[%63, %c0_31, %c0_32], %66 {strides = array<i32>} : memref<8x8x128xf32, #tpu.memory_space<vmem>>, vector<1x8x128xf32>,
      %c0_33 = arith.constant 0 : index
      %c0_34 = arith.constant 0 : index
      %67 = vector.load %arg7[%c0_33, %c0_34] : memref<8x128xf32, #tpu.memory_space<vmem>>, vector<8x128xf32>
      tpu.vector_store %arg7[%c0_33, %c0_34], %62 {strides = array<i32>} : memref<8x128xf32, #tpu.memory_space<vmem>>, vector<8x128xf32>,
      %c1_i32 = arith.constant 1 : i32
      %68 = arith.index_cast %c1_i32 : i32 to index
      %c0_35 = arith.constant 0 : index
      %c0_36 = arith.constant 0 : index
      %69 = vector.load %arg1[%68, %c0_35, %c0_36] : memref<8x8x128xf32, #tpu.memory_space<vmem>>, vector<1x8x128xf32>
      %70 = vector.shape_cast %69 : vector<1x8x128xf32> to vector<8x128xf32>
      %c0_37 = arith.constant 0 : index
      %c0_38 = arith.constant 0 : index
      %71 = vector.load %arg6[%c0_37, %c0_38] : memref<8x128xf32, #tpu.memory_space<vmem>>, vector<8x128xf32>
      %cst_39 = arith.constant -7.000000e+01 : f32
      %72 = vector.broadcast %cst_39 : f32 to vector<8x128xf32>
      %73 = arith.subf %71, %72 : vector<8x128xf32>
      %cst_40 = arith.constant -2.500000e-03 : f32
      %74 = vector.broadcast %cst_40 : f32 to vector<8x128xf32>
      %75 = arith.mulf %74, %73 : vector<8x128xf32>
      %cst_41 = arith.constant 1.000000e+00 : f32
      %76 = vector.broadcast %cst_41 : f32 to vector<8x128xf32>
      %77 = arith.mulf %76, %70 : vector<8x128xf32>
      %78 = arith.addf %75, %77 : vector<8x128xf32>
      %cst_42 = arith.constant 1.17532682 : f32
      %79 = vector.broadcast %cst_42 : f32 to vector<8x128xf32>
      %80 = arith.mulf %79, %78 : vector<8x128xf32>
      %81 = arith.addf %71, %80 : vector<8x128xf32>
      %cst_43 = arith.constant -5.000000e+01 : f32
      %82 = vector.broadcast %cst_43 : f32 to vector<8x128xf32>
      %83 = arith.subf %71, %82 : vector<8x128xf32>
      %cst_44 = arith.constant 0.000000e+00 : f32
      %84 = vector.broadcast %cst_44 : f32 to vector<8x128xf32>
      %85 = arith.cmpf ogt, %83, %84 : vector<8x128xf32>
      %86 = arith.extui %85 : vector<8x128xi1> to vector<8x128xi32>
      %87 = arith.sitofp %86 : vector<8x128xi32> to vector<8x128xf32>
      %cst_45 = arith.constant -7.000000e+01 : f32
      %88 = vector.broadcast %cst_45 : f32 to vector<8x128xf32>
      %89 = arith.subf %81, %88 : vector<8x128xf32>
      %90 = arith.mulf %87, %89 : vector<8x128xf32>
      %91 = arith.subf %81, %90 : vector<8x128xf32>
      %92 = arith.index_cast %c1_i32 : i32 to index
      %c0_46 = arith.constant 0 : index
      %c0_47 = arith.constant 0 : index
      %93 = vector.load %arg5[%92, %c0_46, %c0_47] : memref<8x8x128xf32, #tpu.memory_space<vmem>>, vector<1x8x128xf32>
      %94 = vector.shape_cast %93 : vector<1x8x128xf32> to vector<8x128xf32>
      %95 = vector.shape_cast %87 : vector<8x128xf32> to vector<1x8x128xf32>
      tpu.vector_store %arg5[%92, %c0_46, %c0_47], %95 {strides = array<i32>} : memref<8x8x128xf32, #tpu.memory_space<vmem>>, vector<1x8x128xf32>,
      %c0_48 = arith.constant 0 : index
      %c0_49 = arith.constant 0 : index
      %96 = vector.load %arg6[%c0_48, %c0_49] : memref<8x128xf32, #tpu.memory_space<vmem>>, vector<8x128xf32>
      tpu.vector_store %arg6[%c0_48, %c0_49], %91 {strides = array<i32>} : memref<8x128xf32, #tpu.memory_space<vmem>>, vector<8x128xf32>,
      %97 = arith.truncf %87 : vector<8x128xf32> to vector<8x128xbf16>
      %cst_50 = arith.constant dense<0.000000e+00> : vector<8x128xf32>
      %98 = tpu.matmul %97, %0, %cst_50 {dimension_numbers = #tpu.dot_dimension_numbers<[1], [0], [0], [1], [0, 0, 1, 1], [], []>} : vector<8x128xbf16>, vector<128x128xbf16>, vector<8x128xf32> -> vector<8x128xf32>
      %99 = arith.addf %98, %3 : vector<8x128xf32>
      %c0_51 = arith.constant 0 : index
      %c0_52 = arith.constant 0 : index
      %100 = vector.load %arg7[%c0_51, %c0_52] : memref<8x128xf32, #tpu.memory_space<vmem>>, vector<8x128xf32>
      %cst_53 = arith.constant -7.000000e+01 : f32
      %101 = vector.broadcast %cst_53 : f32 to vector<8x128xf32>
      %102 = arith.subf %100, %101 : vector<8x128xf32>
      %cst_54 = arith.constant -2.500000e-03 : f32
      %103 = vector.broadcast %cst_54 : f32 to vector<8x128xf32>
      %104 = arith.mulf %103, %102 : vector<8x128xf32>
      %cst_55 = arith.constant 1.000000e+00 : f32
      %105 = vector.broadcast %cst_55 : f32 to vector<8x128xf32>
      %106 = arith.mulf %105, %99 : vector<8x128xf32>
      %107 = arith.addf %104, %106 : vector<8x128xf32>
      %cst_56 = arith.constant 1.17532682 : f32
      %108 = vector.broadcast %cst_56 : f32 to vector<8x128xf32>
      %109 = arith.mulf %108, %107 : vector<8x128xf32>
      %110 = arith.addf %100, %109 : vector<8x128xf32>
      %cst_57 = arith.constant -5.000000e+01 : f32
      %111 = vector.broadcast %cst_57 : f32 to vector<8x128xf32>
      %112 = arith.subf %100, %111 : vector<8x128xf32>
      %cst_58 = arith.constant 0.000000e+00 : f32
      %113 = vector.broadcast %cst_58 : f32 to vector<8x128xf32>
      %114 = arith.cmpf ogt, %112, %113 : vector<8x128xf32>
      %115 = arith.extui %114 : vector<8x128xi1> to vector<8x128xi32>
      %116 = arith.sitofp %115 : vector<8x128xi32> to vector<8x128xf32>
      %cst_59 = arith.constant -7.000000e+01 : f32
      %117 = vector.broadcast %cst_59 : f32 to vector<8x128xf32>
      %118 = arith.subf %110, %117 : vector<8x128xf32>
      %119 = arith.mulf %116, %118 : vector<8x128xf32>
      %120 = arith.subf %110, %119 : vector<8x128xf32>
      %121 = arith.index_cast %c1_i32 : i32 to index
      %c0_60 = arith.constant 0 : index
      %c0_61 = arith.constant 0 : index
      %122 = vector.load %arg4[%121, %c0_60, %c0_61] : memref<8x8x128xf32, #tpu.memory_space<vmem>>, vector<1x8x128xf32>
      %123 = vector.shape_cast %122 : vector<1x8x128xf32> to vector<8x128xf32>
      %124 = vector.shape_cast %116 : vector<8x128xf32> to vector<1x8x128xf32>
      tpu.vector_store %arg4[%121, %c0_60, %c0_61], %124 {strides = array<i32>} : memref<8x8x128xf32, #tpu.memory_space<vmem>>, vector<1x8x128xf32>,
      %c0_62 = arith.constant 0 : index
      %c0_63 = arith.constant 0 : index
      %125 = vector.load %arg7[%c0_62, %c0_63] : memref<8x128xf32, #tpu.memory_space<vmem>>, vector<8x128xf32>
      tpu.vector_store %arg7[%c0_62, %c0_63], %120 {strides = array<i32>} : memref<8x128xf32, #tpu.memory_space<vmem>>, vector<8x128xf32>,
      %c2_i32 = arith.constant 2 : i32
      %126 = arith.index_cast %c2_i32 : i32 to index
      %c0_64 = arith.constant 0 : index
      %c0_65 = arith.constant 0 : index
      %127 = vector.load %arg1[%126, %c0_64, %c0_65] : memref<8x8x128xf32, #tpu.memory_space<vmem>>, vector<1x8x128xf32>
      %128 = vector.shape_cast %127 : vector<1x8x128xf32> to vector<8x128xf32>
      %c0_66 = arith.constant 0 : index
      %c0_67 = arith.constant 0 : index
      %129 = vector.load %arg6[%c0_66, %c0_67] : memref<8x128xf32, #tpu.memory_space<vmem>>, vector<8x128xf32>
      %cst_68 = arith.constant -7.000000e+01 : f32
      %130 = vector.broadcast %cst_68 : f32 to vector<8x128xf32>
      %131 = arith.subf %129, %130 : vector<8x128xf32>
      %cst_69 = arith.constant -2.500000e-03 : f32
      %132 = vector.broadcast %cst_69 : f32 to vector<8x128xf32>
      %133 = arith.mulf %132, %131 : vector<8x128xf32>
      %cst_70 = arith.constant 1.000000e+00 : f32
      %134 = vector.broadcast %cst_70 : f32 to vector<8x128xf32>
      %135 = arith.mulf %134, %128 : vector<8x128xf32>
      %136 = arith.addf %133, %135 : vector<8x128xf32>
      %cst_71 = arith.constant 1.17532682 : f32
      %137 = vector.broadcast %cst_71 : f32 to vector<8x128xf32>
      %138 = arith.mulf %137, %136 : vector<8x128xf32>
      %139 = arith.addf %129, %138 : vector<8x128xf32>
      %cst_72 = arith.constant -5.000000e+01 : f32
      %140 = vector.broadcast %cst_72 : f32 to vector<8x128xf32>
      %141 = arith.subf %129, %140 : vector<8x128xf32>
      %cst_73 = arith.constant 0.000000e+00 : f32
      %142 = vector.broadcast %cst_73 : f32 to vector<8x128xf32>
      %143 = arith.cmpf ogt, %141, %142 : vector<8x128xf32>
      %144 = arith.extui %143 : vector<8x128xi1> to vector<8x128xi32>
      %145 = arith.sitofp %144 : vector<8x128xi32> to vector<8x128xf32>
      %cst_74 = arith.constant -7.000000e+01 : f32
      %146 = vector.broadcast %cst_74 : f32 to vector<8x128xf32>
      %147 = arith.subf %139, %146 : vector<8x128xf32>
      %148 = arith.mulf %145, %147 : vector<8x128xf32>
      %149 = arith.subf %139, %148 : vector<8x128xf32>
      %150 = arith.index_cast %c2_i32 : i32 to index
      %c0_75 = arith.constant 0 : index
      %c0_76 = arith.constant 0 : index
      %151 = vector.load %arg5[%150, %c0_75, %c0_76] : memref<8x8x128xf32, #tpu.memory_space<vmem>>, vector<1x8x128xf32>
      %152 = vector.shape_cast %151 : vector<1x8x128xf32> to vector<8x128xf32>
      %153 = vector.shape_cast %145 : vector<8x128xf32> to vector<1x8x128xf32>
      tpu.vector_store %arg5[%150, %c0_75, %c0_76], %153 {strides = array<i32>} : memref<8x8x128xf32, #tpu.memory_space<vmem>>, vector<1x8x128xf32>,
      %c0_77 = arith.constant 0 : index
      %c0_78 = arith.constant 0 : index
      %154 = vector.load %arg6[%c0_77, %c0_78] : memref<8x128xf32, #tpu.memory_space<vmem>>, vector<8x128xf32>
      tpu.vector_store %arg6[%c0_77, %c0_78], %149 {strides = array<i32>} : memref<8x128xf32, #tpu.memory_space<vmem>>, vector<8x128xf32>,
      %155 = arith.truncf %145 : vector<8x128xf32> to vector<8x128xbf16>
      %cst_79 = arith.constant dense<0.000000e+00> : vector<8x128xf32>
      %156 = tpu.matmul %155, %0, %cst_79 {dimension_numbers = #tpu.dot_dimension_numbers<[1], [0], [0], [1], [0, 0, 1, 1], [], []>} : vector<8x128xbf16>, vector<128x128xbf16>, vector<8x128xf32> -> vector<8x128xf32>
      %157 = arith.addf %156, %3 : vector<8x128xf32>
      %c0_80 = arith.constant 0 : index
      %c0_81 = arith.constant 0 : index
      %158 = vector.load %arg7[%c0_80, %c0_81] : memref<8x128xf32, #tpu.memory_space<vmem>>, vector<8x128xf32>
      %cst_82 = arith.constant -7.000000e+01 : f32
      %159 = vector.broadcast %cst_82 : f32 to vector<8x128xf32>
      %160 = arith.subf %158, %159 : vector<8x128xf32>
      %cst_83 = arith.constant -2.500000e-03 : f32
      %161 = vector.broadcast %cst_83 : f32 to vector<8x128xf32>
      %162 = arith.mulf %161, %160 : vector<8x128xf32>
      %cst_84 = arith.constant 1.000000e+00 : f32
      %163 = vector.broadcast %cst_84 : f32 to vector<8x128xf32>
      %164 = arith.mulf %163, %157 : vector<8x128xf32>
      %165 = arith.addf %162, %164 : vector<8x128xf32>
      %cst_85 = arith.constant 1.17532682 : f32
      %166 = vector.broadcast %cst_85 : f32 to vector<8x128xf32>
      %167 = arith.mulf %166, %165 : vector<8x128xf32>
      %168 = arith.addf %158, %167 : vector<8x128xf32>
      %cst_86 = arith.constant -5.000000e+01 : f32
      %169 = vector.broadcast %cst_86 : f32 to vector<8x128xf32>
      %170 = arith.subf %158, %169 : vector<8x128xf32>
      %cst_87 = arith.constant 0.000000e+00 : f32
      %171 = vector.broadcast %cst_87 : f32 to vector<8x128xf32>
      %172 = arith.cmpf ogt, %170, %171 : vector<8x128xf32>
      %173 = arith.extui %172 : vector<8x128xi1> to vector<8x128xi32>
      %174 = arith.sitofp %173 : vector<8x128xi32> to vector<8x128xf32>
      %cst_88 = arith.constant -7.000000e+01 : f32
      %175 = vector.broadcast %cst_88 : f32 to vector<8x128xf32>
      %176 = arith.subf %168, %175 : vector<8x128xf32>
      %177 = arith.mulf %174, %176 : vector<8x128xf32>
      %178 = arith.subf %168, %177 : vector<8x128xf32>
      %179 = arith.index_cast %c2_i32 : i32 to index
      %c0_89 = arith.constant 0 : index
      %c0_90 = arith.constant 0 : index
      %180 = vector.load %arg4[%179, %c0_89, %c0_90] : memref<8x8x128xf32, #tpu.memory_space<vmem>>, vector<1x8x128xf32>
      %181 = vector.shape_cast %180 : vector<1x8x128xf32> to vector<8x128xf32>
      %182 = vector.shape_cast %174 : vector<8x128xf32> to vector<1x8x128xf32>
      tpu.vector_store %arg4[%179, %c0_89, %c0_90], %182 {strides = array<i32>} : memref<8x8x128xf32, #tpu.memory_space<vmem>>, vector<1x8x128xf32>,
      %c0_91 = arith.constant 0 : index
      %c0_92 = arith.constant 0 : index
      %183 = vector.load %arg7[%c0_91, %c0_92] : memref<8x128xf32, #tpu.memory_space<vmem>>, vector<8x128xf32>
      tpu.vector_store %arg7[%c0_91, %c0_92], %178 {strides = array<i32>} : memref<8x128xf32, #tpu.memory_space<vmem>>, vector<8x128xf32>,
      %c3_i32 = arith.constant 3 : i32
      %184 = arith.index_cast %c3_i32 : i32 to index
      %c0_93 = arith.constant 0 : index
      %c0_94 = arith.constant 0 : index
      %185 = vector.load %arg1[%184, %c0_93, %c0_94] : memref<8x8x128xf32, #tpu.memory_space<vmem>>, vector<1x8x128xf32>
      %186 = vector.shape_cast %185 : vector<1x8x128xf32> to vector<8x128xf32>
      %c0_95 = arith.constant 0 : index
      %c0_96 = arith.constant 0 : index
      %187 = vector.load %arg6[%c0_95, %c0_96] : memref<8x128xf32, #tpu.memory_space<vmem>>, vector<8x128xf32>
      %cst_97 = arith.constant -7.000000e+01 : f32
      %188 = vector.broadcast %cst_97 : f32 to vector<8x128xf32>
      %189 = arith.subf %187, %188 : vector<8x128xf32>
      %cst_98 = arith.constant -2.500000e-03 : f32
      %190 = vector.broadcast %cst_98 : f32 to vector<8x128xf32>
      %191 = arith.mulf %190, %189 : vector<8x128xf32>
      %cst_99 = arith.constant 1.000000e+00 : f32
      %192 = vector.broadcast %cst_99 : f32 to vector<8x128xf32>
      %193 = arith.mulf %192, %186 : vector<8x128xf32>
      %194 = arith.addf %191, %193 : vector<8x128xf32>
      %cst_100 = arith.constant 1.17532682 : f32
      %195 = vector.broadcast %cst_100 : f32 to vector<8x128xf32>
      %196 = arith.mulf %195, %194 : vector<8x128xf32>
      %197 = arith.addf %187, %196 : vector<8x128xf32>
      %cst_101 = arith.constant -5.000000e+01 : f32
      %198 = vector.broadcast %cst_101 : f32 to vector<8x128xf32>
      %199 = arith.subf %187, %198 : vector<8x128xf32>
      %cst_102 = arith.constant 0.000000e+00 : f32
      %200 = vector.broadcast %cst_102 : f32 to vector<8x128xf32>
      %201 = arith.cmpf ogt, %199, %200 : vector<8x128xf32>
      %202 = arith.extui %201 : vector<8x128xi1> to vector<8x128xi32>
      %203 = arith.sitofp %202 : vector<8x128xi32> to vector<8x128xf32>
      %cst_103 = arith.constant -7.000000e+01 : f32
      %204 = vector.broadcast %cst_103 : f32 to vector<8x128xf32>
      %205 = arith.subf %197, %204 : vector<8x128xf32>
      %206 = arith.mulf %203, %205 : vector<8x128xf32>
      %207 = arith.subf %197, %206 : vector<8x128xf32>
      %208 = arith.index_cast %c3_i32 : i32 to index
      %c0_104 = arith.constant 0 : index
      %c0_105 = arith.constant 0 : index
      %209 = vector.load %arg5[%208, %c0_104, %c0_105] : memref<8x8x128xf32, #tpu.memory_space<vmem>>, vector<1x8x128xf32>
      %210 = vector.shape_cast %209 : vector<1x8x128xf32> to vector<8x128xf32>
      %211 = vector.shape_cast %203 : vector<8x128xf32> to vector<1x8x128xf32>
      tpu.vector_store %arg5[%208, %c0_104, %c0_105], %211 {strides = array<i32>} : memref<8x8x128xf32, #tpu.memory_space<vmem>>, vector<1x8x128xf32>,
      %c0_106 = arith.constant 0 : index
      %c0_107 = arith.constant 0 : index
      %212 = vector.load %arg6[%c0_106, %c0_107] : memref<8x128xf32, #tpu.memory_space<vmem>>, vector<8x128xf32>
      tpu.vector_store %arg6[%c0_106, %c0_107], %207 {strides = array<i32>} : memref<8x128xf32, #tpu.memory_space<vmem>>, vector<8x128xf32>,
      %213 = arith.truncf %203 : vector<8x128xf32> to vector<8x128xbf16>
      %cst_108 = arith.constant dense<0.000000e+00> : vector<8x128xf32>
      %214 = tpu.matmul %213, %0, %cst_108 {dimension_numbers = #tpu.dot_dimension_numbers<[1], [0], [0], [1], [0, 0, 1, 1], [], []>} : vector<8x128xbf16>, vector<128x128xbf16>, vector<8x128xf32> -> vector<8x128xf32>
      %215 = arith.addf %214, %3 : vector<8x128xf32>
      %c0_109 = arith.constant 0 : index
      %c0_110 = arith.constant 0 : index
      %216 = vector.load %arg7[%c0_109, %c0_110] : memref<8x128xf32, #tpu.memory_space<vmem>>, vector<8x128xf32>
      %cst_111 = arith.constant -7.000000e+01 : f32
      %217 = vector.broadcast %cst_111 : f32 to vector<8x128xf32>
      %218 = arith.subf %216, %217 : vector<8x128xf32>
      %cst_112 = arith.constant -2.500000e-03 : f32
      %219 = vector.broadcast %cst_112 : f32 to vector<8x128xf32>
      %220 = arith.mulf %219, %218 : vector<8x128xf32>
      %cst_113 = arith.constant 1.000000e+00 : f32
      %221 = vector.broadcast %cst_113 : f32 to vector<8x128xf32>
      %222 = arith.mulf %221, %215 : vector<8x128xf32>
      %223 = arith.addf %220, %222 : vector<8x128xf32>
      %cst_114 = arith.constant 1.17532682 : f32
      %224 = vector.broadcast %cst_114 : f32 to vector<8x128xf32>
      %225 = arith.mulf %224, %223 : vector<8x128xf32>
      %226 = arith.addf %216, %225 : vector<8x128xf32>
      %cst_115 = arith.constant -5.000000e+01 : f32
      %227 = vector.broadcast %cst_115 : f32 to vector<8x128xf32>
      %228 = arith.subf %216, %227 : vector<8x128xf32>
      %cst_116 = arith.constant 0.000000e+00 : f32
      %229 = vector.broadcast %cst_116 : f32 to vector<8x128xf32>
      %230 = arith.cmpf ogt, %228, %229 : vector<8x128xf32>
      %231 = arith.extui %230 : vector<8x128xi1> to vector<8x128xi32>
      %232 = arith.sitofp %231 : vector<8x128xi32> to vector<8x128xf32>
      %cst_117 = arith.constant -7.000000e+01 : f32
      %233 = vector.broadcast %cst_117 : f32 to vector<8x128xf32>
      %234 = arith.subf %226, %233 : vector<8x128xf32>
      %235 = arith.mulf %232, %234 : vector<8x128xf32>
      %236 = arith.subf %226, %235 : vector<8x128xf32>
      %237 = arith.index_cast %c3_i32 : i32 to index
      %c0_118 = arith.constant 0 : index
      %c0_119 = arith.constant 0 : index
      %238 = vector.load %arg4[%237, %c0_118, %c0_119] : memref<8x8x128xf32, #tpu.memory_space<vmem>>, vector<1x8x128xf32>
      %239 = vector.shape_cast %238 : vector<1x8x128xf32> to vector<8x128xf32>
      %240 = vector.shape_cast %232 : vector<8x128xf32> to vector<1x8x128xf32>
      tpu.vector_store %arg4[%237, %c0_118, %c0_119], %240 {strides = array<i32>} : memref<8x8x128xf32, #tpu.memory_space<vmem>>, vector<1x8x128xf32>,
      %c0_120 = arith.constant 0 : index
      %c0_121 = arith.constant 0 : index
      %241 = vector.load %arg7[%c0_120, %c0_121] : memref<8x128xf32, #tpu.memory_space<vmem>>, vector<8x128xf32>
      tpu.vector_store %arg7[%c0_120, %c0_121], %236 {strides = array<i32>} : memref<8x128xf32, #tpu.memory_space<vmem>>, vector<8x128xf32>,
      %c4_i32 = arith.constant 4 : i32
      %242 = arith.index_cast %c4_i32 : i32 to index
      %c0_122 = arith.constant 0 : index
      %c0_123 = arith.constant 0 : index
      %243 = vector.load %arg1[%242, %c0_122, %c0_123] : memref<8x8x128xf32, #tpu.memory_space<vmem>>, vector<1x8x128xf32>
      %244 = vector.shape_cast %243 : vector<1x8x128xf32> to vector<8x128xf32>
      %c0_124 = arith.constant 0 : index
      %c0_125 = arith.constant 0 : index
      %245 = vector.load %arg6[%c0_124, %c0_125] : memref<8x128xf32, #tpu.memory_space<vmem>>, vector<8x128xf32>
      %cst_126 = arith.constant -7.000000e+01 : f32
      %246 = vector.broadcast %cst_126 : f32 to vector<8x128xf32>
      %247 = arith.subf %245, %246 : vector<8x128xf32>
      %cst_127 = arith.constant -2.500000e-03 : f32
      %248 = vector.broadcast %cst_127 : f32 to vector<8x128xf32>
      %249 = arith.mulf %248, %247 : vector<8x128xf32>
      %cst_128 = arith.constant 1.000000e+00 : f32
      %250 = vector.broadcast %cst_128 : f32 to vector<8x128xf32>
      %251 = arith.mulf %250, %244 : vector<8x128xf32>
      %252 = arith.addf %249, %251 : vector<8x128xf32>
      %cst_129 = arith.constant 1.17532682 : f32
      %253 = vector.broadcast %cst_129 : f32 to vector<8x128xf32>
      %254 = arith.mulf %253, %252 : vector<8x128xf32>
      %255 = arith.addf %245, %254 : vector<8x128xf32>
      %cst_130 = arith.constant -5.000000e+01 : f32
      %256 = vector.broadcast %cst_130 : f32 to vector<8x128xf32>
      %257 = arith.subf %245, %256 : vector<8x128xf32>
      %cst_131 = arith.constant 0.000000e+00 : f32
      %258 = vector.broadcast %cst_131 : f32 to vector<8x128xf32>
      %259 = arith.cmpf ogt, %257, %258 : vector<8x128xf32>
      %260 = arith.extui %259 : vector<8x128xi1> to vector<8x128xi32>
      %261 = arith.sitofp %260 : vector<8x128xi32> to vector<8x128xf32>
      %cst_132 = arith.constant -7.000000e+01 : f32
      %262 = vector.broadcast %cst_132 : f32 to vector<8x128xf32>
      %263 = arith.subf %255, %262 : vector<8x128xf32>
      %264 = arith.mulf %261, %263 : vector<8x128xf32>
      %265 = arith.subf %255, %264 : vector<8x128xf32>
      %266 = arith.index_cast %c4_i32 : i32 to index
      %c0_133 = arith.constant 0 : index
      %c0_134 = arith.constant 0 : index
      %267 = vector.load %arg5[%266, %c0_133, %c0_134] : memref<8x8x128xf32, #tpu.memory_space<vmem>>, vector<1x8x128xf32>
      %268 = vector.shape_cast %267 : vector<1x8x128xf32> to vector<8x128xf32>
      %269 = vector.shape_cast %261 : vector<8x128xf32> to vector<1x8x128xf32>
      tpu.vector_store %arg5[%266, %c0_133, %c0_134], %269 {strides = array<i32>} : memref<8x8x128xf32, #tpu.memory_space<vmem>>, vector<1x8x128xf32>,
      %c0_135 = arith.constant 0 : index
      %c0_136 = arith.constant 0 : index
      %270 = vector.load %arg6[%c0_135, %c0_136] : memref<8x128xf32, #tpu.memory_space<vmem>>, vector<8x128xf32>
      tpu.vector_store %arg6[%c0_135, %c0_136], %265 {strides = array<i32>} : memref<8x128xf32, #tpu.memory_space<vmem>>, vector<8x128xf32>,
      %271 = arith.truncf %261 : vector<8x128xf32> to vector<8x128xbf16>
      %cst_137 = arith.constant dense<0.000000e+00> : vector<8x128xf32>
      %272 = tpu.matmul %271, %0, %cst_137 {dimension_numbers = #tpu.dot_dimension_numbers<[1], [0], [0], [1], [0, 0, 1, 1], [], []>} : vector<8x128xbf16>, vector<128x128xbf16>, vector<8x128xf32> -> vector<8x128xf32>
      %273 = arith.addf %272, %3 : vector<8x128xf32>
      %c0_138 = arith.constant 0 : index
      %c0_139 = arith.constant 0 : index
      %274 = vector.load %arg7[%c0_138, %c0_139] : memref<8x128xf32, #tpu.memory_space<vmem>>, vector<8x128xf32>
      %cst_140 = arith.constant -7.000000e+01 : f32
      %275 = vector.broadcast %cst_140 : f32 to vector<8x128xf32>
      %276 = arith.subf %274, %275 : vector<8x128xf32>
      %cst_141 = arith.constant -2.500000e-03 : f32
      %277 = vector.broadcast %cst_141 : f32 to vector<8x128xf32>
      %278 = arith.mulf %277, %276 : vector<8x128xf32>
      %cst_142 = arith.constant 1.000000e+00 : f32
      %279 = vector.broadcast %cst_142 : f32 to vector<8x128xf32>
      %280 = arith.mulf %279, %273 : vector<8x128xf32>
      %281 = arith.addf %278, %280 : vector<8x128xf32>
      %cst_143 = arith.constant 1.17532682 : f32
      %282 = vector.broadcast %cst_143 : f32 to vector<8x128xf32>
      %283 = arith.mulf %282, %281 : vector<8x128xf32>
      %284 = arith.addf %274, %283 : vector<8x128xf32>
      %cst_144 = arith.constant -5.000000e+01 : f32
      %285 = vector.broadcast %cst_144 : f32 to vector<8x128xf32>
      %286 = arith.subf %274, %285 : vector<8x128xf32>
      %cst_145 = arith.constant 0.000000e+00 : f32
      %287 = vector.broadcast %cst_145 : f32 to vector<8x128xf32>
      %288 = arith.cmpf ogt, %286, %287 : vector<8x128xf32>
      %289 = arith.extui %288 : vector<8x128xi1> to vector<8x128xi32>
      %290 = arith.sitofp %289 : vector<8x128xi32> to vector<8x128xf32>
      %cst_146 = arith.constant -7.000000e+01 : f32
      %291 = vector.broadcast %cst_146 : f32 to vector<8x128xf32>
      %292 = arith.subf %284, %291 : vector<8x128xf32>
      %293 = arith.mulf %290, %292 : vector<8x128xf32>
      %294 = arith.subf %284, %293 : vector<8x128xf32>
      %295 = arith.index_cast %c4_i32 : i32 to index
      %c0_147 = arith.constant 0 : index
      %c0_148 = arith.constant 0 : index
      %296 = vector.load %arg4[%295, %c0_147, %c0_148] : memref<8x8x128xf32, #tpu.memory_space<vmem>>, vector<1x8x128xf32>
      %297 = vector.shape_cast %296 : vector<1x8x128xf32> to vector<8x128xf32>
      %298 = vector.shape_cast %290 : vector<8x128xf32> to vector<1x8x128xf32>
      tpu.vector_store %arg4[%295, %c0_147, %c0_148], %298 {strides = array<i32>} : memref<8x8x128xf32, #tpu.memory_space<vmem>>, vector<1x8x128xf32>,
      %c0_149 = arith.constant 0 : index
      %c0_150 = arith.constant 0 : index
      %299 = vector.load %arg7[%c0_149, %c0_150] : memref<8x128xf32, #tpu.memory_space<vmem>>, vector<8x128xf32>
      tpu.vector_store %arg7[%c0_149, %c0_150], %294 {strides = array<i32>} : memref<8x128xf32, #tpu.memory_space<vmem>>, vector<8x128xf32>,
      %c5_i32 = arith.constant 5 : i32
      %300 = arith.index_cast %c5_i32 : i32 to index
      %c0_151 = arith.constant 0 : index
      %c0_152 = arith.constant 0 : index
      %301 = vector.load %arg1[%300, %c0_151, %c0_152] : memref<8x8x128xf32, #tpu.memory_space<vmem>>, vector<1x8x128xf32>
      %302 = vector.shape_cast %301 : vector<1x8x128xf32> to vector<8x128xf32>
      %c0_153 = arith.constant 0 : index
      %c0_154 = arith.constant 0 : index
      %303 = vector.load %arg6[%c0_153, %c0_154] : memref<8x128xf32, #tpu.memory_space<vmem>>, vector<8x128xf32>
      %cst_155 = arith.constant -7.000000e+01 : f32
      %304 = vector.broadcast %cst_155 : f32 to vector<8x128xf32>
      %305 = arith.subf %303, %304 : vector<8x128xf32>
      %cst_156 = arith.constant -2.500000e-03 : f32
      %306 = vector.broadcast %cst_156 : f32 to vector<8x128xf32>
      %307 = arith.mulf %306, %305 : vector<8x128xf32>
      %cst_157 = arith.constant 1.000000e+00 : f32
      %308 = vector.broadcast %cst_157 : f32 to vector<8x128xf32>
      %309 = arith.mulf %308, %302 : vector<8x128xf32>
      %310 = arith.addf %307, %309 : vector<8x128xf32>
      %cst_158 = arith.constant 1.17532682 : f32
      %311 = vector.broadcast %cst_158 : f32 to vector<8x128xf32>
      %312 = arith.mulf %311, %310 : vector<8x128xf32>
      %313 = arith.addf %303, %312 : vector<8x128xf32>
      %cst_159 = arith.constant -5.000000e+01 : f32
      %314 = vector.broadcast %cst_159 : f32 to vector<8x128xf32>
      %315 = arith.subf %303, %314 : vector<8x128xf32>
      %cst_160 = arith.constant 0.000000e+00 : f32
      %316 = vector.broadcast %cst_160 : f32 to vector<8x128xf32>
      %317 = arith.cmpf ogt, %315, %316 : vector<8x128xf32>
      %318 = arith.extui %317 : vector<8x128xi1> to vector<8x128xi32>
      %319 = arith.sitofp %318 : vector<8x128xi32> to vector<8x128xf32>
      %cst_161 = arith.constant -7.000000e+01 : f32
      %320 = vector.broadcast %cst_161 : f32 to vector<8x128xf32>
      %321 = arith.subf %313, %320 : vector<8x128xf32>
      %322 = arith.mulf %319, %321 : vector<8x128xf32>
      %323 = arith.subf %313, %322 : vector<8x128xf32>
      %324 = arith.index_cast %c5_i32 : i32 to index
      %c0_162 = arith.constant 0 : index
      %c0_163 = arith.constant 0 : index
      %325 = vector.load %arg5[%324, %c0_162, %c0_163] : memref<8x8x128xf32, #tpu.memory_space<vmem>>, vector<1x8x128xf32>
      %326 = vector.shape_cast %325 : vector<1x8x128xf32> to vector<8x128xf32>
      %327 = vector.shape_cast %319 : vector<8x128xf32> to vector<1x8x128xf32>
      tpu.vector_store %arg5[%324, %c0_162, %c0_163], %327 {strides = array<i32>} : memref<8x8x128xf32, #tpu.memory_space<vmem>>, vector<1x8x128xf32>,
      %c0_164 = arith.constant 0 : index
      %c0_165 = arith.constant 0 : index
      %328 = vector.load %arg6[%c0_164, %c0_165] : memref<8x128xf32, #tpu.memory_space<vmem>>, vector<8x128xf32>
      tpu.vector_store %arg6[%c0_164, %c0_165], %323 {strides = array<i32>} : memref<8x128xf32, #tpu.memory_space<vmem>>, vector<8x128xf32>,
      %329 = arith.truncf %319 : vector<8x128xf32> to vector<8x128xbf16>
      %cst_166 = arith.constant dense<0.000000e+00> : vector<8x128xf32>
      %330 = tpu.matmul %329, %0, %cst_166 {dimension_numbers = #tpu.dot_dimension_numbers<[1], [0], [0], [1], [0, 0, 1, 1], [], []>} : vector<8x128xbf16>, vector<128x128xbf16>, vector<8x128xf32> -> vector<8x128xf32>
      %331 = arith.addf %330, %3 : vector<8x128xf32>
      %c0_167 = arith.constant 0 : index
      %c0_168 = arith.constant 0 : index
      %332 = vector.load %arg7[%c0_167, %c0_168] : memref<8x128xf32, #tpu.memory_space<vmem>>, vector<8x128xf32>
      %cst_169 = arith.constant -7.000000e+01 : f32
      %333 = vector.broadcast %cst_169 : f32 to vector<8x128xf32>
      %334 = arith.subf %332, %333 : vector<8x128xf32>
      %cst_170 = arith.constant -2.500000e-03 : f32
      %335 = vector.broadcast %cst_170 : f32 to vector<8x128xf32>
      %336 = arith.mulf %335, %334 : vector<8x128xf32>
      %cst_171 = arith.constant 1.000000e+00 : f32
      %337 = vector.broadcast %cst_171 : f32 to vector<8x128xf32>
      %338 = arith.mulf %337, %331 : vector<8x128xf32>
      %339 = arith.addf %336, %338 : vector<8x128xf32>
      %cst_172 = arith.constant 1.17532682 : f32
      %340 = vector.broadcast %cst_172 : f32 to vector<8x128xf32>
      %341 = arith.mulf %340, %339 : vector<8x128xf32>
      %342 = arith.addf %332, %341 : vector<8x128xf32>
      %cst_173 = arith.constant -5.000000e+01 : f32
      %343 = vector.broadcast %cst_173 : f32 to vector<8x128xf32>
      %344 = arith.subf %332, %343 : vector<8x128xf32>
      %cst_174 = arith.constant 0.000000e+00 : f32
      %345 = vector.broadcast %cst_174 : f32 to vector<8x128xf32>
      %346 = arith.cmpf ogt, %344, %345 : vector<8x128xf32>
      %347 = arith.extui %346 : vector<8x128xi1> to vector<8x128xi32>
      %348 = arith.sitofp %347 : vector<8x128xi32> to vector<8x128xf32>
      %cst_175 = arith.constant -7.000000e+01 : f32
      %349 = vector.broadcast %cst_175 : f32 to vector<8x128xf32>
      %350 = arith.subf %342, %349 : vector<8x128xf32>
      %351 = arith.mulf %348, %350 : vector<8x128xf32>
      %352 = arith.subf %342, %351 : vector<8x128xf32>
      %353 = arith.index_cast %c5_i32 : i32 to index
      %c0_176 = arith.constant 0 : index
      %c0_177 = arith.constant 0 : index
      %354 = vector.load %arg4[%353, %c0_176, %c0_177] : memref<8x8x128xf32, #tpu.memory_space<vmem>>, vector<1x8x128xf32>
      %355 = vector.shape_cast %354 : vector<1x8x128xf32> to vector<8x128xf32>
      %356 = vector.shape_cast %348 : vector<8x128xf32> to vector<1x8x128xf32>
      tpu.vector_store %arg4[%353, %c0_176, %c0_177], %356 {strides = array<i32>} : memref<8x8x128xf32, #tpu.memory_space<vmem>>, vector<1x8x128xf32>,
      %c0_178 = arith.constant 0 : index
      %c0_179 = arith.constant 0 : index
      %357 = vector.load %arg7[%c0_178, %c0_179] : memref<8x128xf32, #tpu.memory_space<vmem>>, vector<8x128xf32>
      tpu.vector_store %arg7[%c0_178, %c0_179], %352 {strides = array<i32>} : memref<8x128xf32, #tpu.memory_space<vmem>>, vector<8x128xf32>,
      %c6_i32 = arith.constant 6 : i32
      %358 = arith.index_cast %c6_i32 : i32 to index
      %c0_180 = arith.constant 0 : index
      %c0_181 = arith.constant 0 : index
      %359 = vector.load %arg1[%358, %c0_180, %c0_181] : memref<8x8x128xf32, #tpu.memory_space<vmem>>, vector<1x8x128xf32>
      %360 = vector.shape_cast %359 : vector<1x8x128xf32> to vector<8x128xf32>
      %c0_182 = arith.constant 0 : index
      %c0_183 = arith.constant 0 : index
      %361 = vector.load %arg6[%c0_182, %c0_183] : memref<8x128xf32, #tpu.memory_space<vmem>>, vector<8x128xf32>
      %cst_184 = arith.constant -7.000000e+01 : f32
      %362 = vector.broadcast %cst_184 : f32 to vector<8x128xf32>
      %363 = arith.subf %361, %362 : vector<8x128xf32>
      %cst_185 = arith.constant -2.500000e-03 : f32
      %364 = vector.broadcast %cst_185 : f32 to vector<8x128xf32>
      %365 = arith.mulf %364, %363 : vector<8x128xf32>
      %cst_186 = arith.constant 1.000000e+00 : f32
      %366 = vector.broadcast %cst_186 : f32 to vector<8x128xf32>
      %367 = arith.mulf %366, %360 : vector<8x128xf32>
      %368 = arith.addf %365, %367 : vector<8x128xf32>
      %cst_187 = arith.constant 1.17532682 : f32
      %369 = vector.broadcast %cst_187 : f32 to vector<8x128xf32>
      %370 = arith.mulf %369, %368 : vector<8x128xf32>
      %371 = arith.addf %361, %370 : vector<8x128xf32>
      %cst_188 = arith.constant -5.000000e+01 : f32
      %372 = vector.broadcast %cst_188 : f32 to vector<8x128xf32>
      %373 = arith.subf %361, %372 : vector<8x128xf32>
      %cst_189 = arith.constant 0.000000e+00 : f32
      %374 = vector.broadcast %cst_189 : f32 to vector<8x128xf32>
      %375 = arith.cmpf ogt, %373, %374 : vector<8x128xf32>
      %376 = arith.extui %375 : vector<8x128xi1> to vector<8x128xi32>
      %377 = arith.sitofp %376 : vector<8x128xi32> to vector<8x128xf32>
      %cst_190 = arith.constant -7.000000e+01 : f32
      %378 = vector.broadcast %cst_190 : f32 to vector<8x128xf32>
      %379 = arith.subf %371, %378 : vector<8x128xf32>
      %380 = arith.mulf %377, %379 : vector<8x128xf32>
      %381 = arith.subf %371, %380 : vector<8x128xf32>
      %382 = arith.index_cast %c6_i32 : i32 to index
      %c0_191 = arith.constant 0 : index
      %c0_192 = arith.constant 0 : index
      %383 = vector.load %arg5[%382, %c0_191, %c0_192] : memref<8x8x128xf32, #tpu.memory_space<vmem>>, vector<1x8x128xf32>
      %384 = vector.shape_cast %383 : vector<1x8x128xf32> to vector<8x128xf32>
      %385 = vector.shape_cast %377 : vector<8x128xf32> to vector<1x8x128xf32>
      tpu.vector_store %arg5[%382, %c0_191, %c0_192], %385 {strides = array<i32>} : memref<8x8x128xf32, #tpu.memory_space<vmem>>, vector<1x8x128xf32>,
      %c0_193 = arith.constant 0 : index
      %c0_194 = arith.constant 0 : index
      %386 = vector.load %arg6[%c0_193, %c0_194] : memref<8x128xf32, #tpu.memory_space<vmem>>, vector<8x128xf32>
      tpu.vector_store %arg6[%c0_193, %c0_194], %381 {strides = array<i32>} : memref<8x128xf32, #tpu.memory_space<vmem>>, vector<8x128xf32>,
      %387 = arith.truncf %377 : vector<8x128xf32> to vector<8x128xbf16>
      %cst_195 = arith.constant dense<0.000000e+00> : vector<8x128xf32>
      %388 = tpu.matmul %387, %0, %cst_195 {dimension_numbers = #tpu.dot_dimension_numbers<[1], [0], [0], [1], [0, 0, 1, 1], [], []>} : vector<8x128xbf16>, vector<128x128xbf16>, vector<8x128xf32> -> vector<8x128xf32>
      %389 = arith.addf %388, %3 : vector<8x128xf32>
      %c0_196 = arith.constant 0 : index
      %c0_197 = arith.constant 0 : index
      %390 = vector.load %arg7[%c0_196, %c0_197] : memref<8x128xf32, #tpu.memory_space<vmem>>, vector<8x128xf32>
      %cst_198 = arith.constant -7.000000e+01 : f32
      %391 = vector.broadcast %cst_198 : f32 to vector<8x128xf32>
      %392 = arith.subf %390, %391 : vector<8x128xf32>
      %cst_199 = arith.constant -2.500000e-03 : f32
      %393 = vector.broadcast %cst_199 : f32 to vector<8x128xf32>
      %394 = arith.mulf %393, %392 : vector<8x128xf32>
      %cst_200 = arith.constant 1.000000e+00 : f32
      %395 = vector.broadcast %cst_200 : f32 to vector<8x128xf32>
      %396 = arith.mulf %395, %389 : vector<8x128xf32>
      %397 = arith.addf %394, %396 : vector<8x128xf32>
      %cst_201 = arith.constant 1.17532682 : f32
      %398 = vector.broadcast %cst_201 : f32 to vector<8x128xf32>
      %399 = arith.mulf %398, %397 : vector<8x128xf32>
      %400 = arith.addf %390, %399 : vector<8x128xf32>
      %cst_202 = arith.constant -5.000000e+01 : f32
      %401 = vector.broadcast %cst_202 : f32 to vector<8x128xf32>
      %402 = arith.subf %390, %401 : vector<8x128xf32>
      %cst_203 = arith.constant 0.000000e+00 : f32
      %403 = vector.broadcast %cst_203 : f32 to vector<8x128xf32>
      %404 = arith.cmpf ogt, %402, %403 : vector<8x128xf32>
      %405 = arith.extui %404 : vector<8x128xi1> to vector<8x128xi32>
      %406 = arith.sitofp %405 : vector<8x128xi32> to vector<8x128xf32>
      %cst_204 = arith.constant -7.000000e+01 : f32
      %407 = vector.broadcast %cst_204 : f32 to vector<8x128xf32>
      %408 = arith.subf %400, %407 : vector<8x128xf32>
      %409 = arith.mulf %406, %408 : vector<8x128xf32>
      %410 = arith.subf %400, %409 : vector<8x128xf32>
      %411 = arith.index_cast %c6_i32 : i32 to index
      %c0_205 = arith.constant 0 : index
      %c0_206 = arith.constant 0 : index
      %412 = vector.load %arg4[%411, %c0_205, %c0_206] : memref<8x8x128xf32, #tpu.memory_space<vmem>>, vector<1x8x128xf32>
      %413 = vector.shape_cast %412 : vector<1x8x128xf32> to vector<8x128xf32>
      %414 = vector.shape_cast %406 : vector<8x128xf32> to vector<1x8x128xf32>
      tpu.vector_store %arg4[%411, %c0_205, %c0_206], %414 {strides = array<i32>} : memref<8x8x128xf32, #tpu.memory_space<vmem>>, vector<1x8x128xf32>,
      %c0_207 = arith.constant 0 : index
      %c0_208 = arith.constant 0 : index
      %415 = vector.load %arg7[%c0_207, %c0_208] : memref<8x128xf32, #tpu.memory_space<vmem>>, vector<8x128xf32>
      tpu.vector_store %arg7[%c0_207, %c0_208], %410 {strides = array<i32>} : memref<8x128xf32, #tpu.memory_space<vmem>>, vector<8x128xf32>,
      %c7_i32 = arith.constant 7 : i32
      %416 = arith.index_cast %c7_i32 : i32 to index
      %c0_209 = arith.constant 0 : index
      %c0_210 = arith.constant 0 : index
      %417 = vector.load %arg1[%416, %c0_209, %c0_210] : memref<8x8x128xf32, #tpu.memory_space<vmem>>, vector<1x8x128xf32>
      %418 = vector.shape_cast %417 : vector<1x8x128xf32> to vector<8x128xf32>
      %c0_211 = arith.constant 0 : index
      %c0_212 = arith.constant 0 : index
      %419 = vector.load %arg6[%c0_211, %c0_212] : memref<8x128xf32, #tpu.memory_space<vmem>>, vector<8x128xf32>
      %cst_213 = arith.constant -7.000000e+01 : f32
      %420 = vector.broadcast %cst_213 : f32 to vector<8x128xf32>
      %421 = arith.subf %419, %420 : vector<8x128xf32>
      %cst_214 = arith.constant -2.500000e-03 : f32
      %422 = vector.broadcast %cst_214 : f32 to vector<8x128xf32>
      %423 = arith.mulf %422, %421 : vector<8x128xf32>
      %cst_215 = arith.constant 1.000000e+00 : f32
      %424 = vector.broadcast %cst_215 : f32 to vector<8x128xf32>
      %425 = arith.mulf %424, %418 : vector<8x128xf32>
      %426 = arith.addf %423, %425 : vector<8x128xf32>
      %cst_216 = arith.constant 1.17532682 : f32
      %427 = vector.broadcast %cst_216 : f32 to vector<8x128xf32>
      %428 = arith.mulf %427, %426 : vector<8x128xf32>
      %429 = arith.addf %419, %428 : vector<8x128xf32>
      %cst_217 = arith.constant -5.000000e+01 : f32
      %430 = vector.broadcast %cst_217 : f32 to vector<8x128xf32>
      %431 = arith.subf %419, %430 : vector<8x128xf32>
      %cst_218 = arith.constant 0.000000e+00 : f32
      %432 = vector.broadcast %cst_218 : f32 to vector<8x128xf32>
      %433 = arith.cmpf ogt, %431, %432 : vector<8x128xf32>
      %434 = arith.extui %433 : vector<8x128xi1> to vector<8x128xi32>
      %435 = arith.sitofp %434 : vector<8x128xi32> to vector<8x128xf32>
      %cst_219 = arith.constant -7.000000e+01 : f32
      %436 = vector.broadcast %cst_219 : f32 to vector<8x128xf32>
      %437 = arith.subf %429, %436 : vector<8x128xf32>
      %438 = arith.mulf %435, %437 : vector<8x128xf32>
      %439 = arith.subf %429, %438 : vector<8x128xf32>
      %440 = arith.index_cast %c7_i32 : i32 to index
      %c0_220 = arith.constant 0 : index
      %c0_221 = arith.constant 0 : index
      %441 = vector.load %arg5[%440, %c0_220, %c0_221] : memref<8x8x128xf32, #tpu.memory_space<vmem>>, vector<1x8x128xf32>
      %442 = vector.shape_cast %441 : vector<1x8x128xf32> to vector<8x128xf32>
      %443 = vector.shape_cast %435 : vector<8x128xf32> to vector<1x8x128xf32>
      tpu.vector_store %arg5[%440, %c0_220, %c0_221], %443 {strides = array<i32>} : memref<8x8x128xf32, #tpu.memory_space<vmem>>, vector<1x8x128xf32>,
      %c0_222 = arith.constant 0 : index
      %c0_223 = arith.constant 0 : index
      %444 = vector.load %arg6[%c0_222, %c0_223] : memref<8x128xf32, #tpu.memory_space<vmem>>, vector<8x128xf32>
      tpu.vector_store %arg6[%c0_222, %c0_223], %439 {strides = array<i32>} : memref<8x128xf32, #tpu.memory_space<vmem>>, vector<8x128xf32>,
      %445 = arith.truncf %435 : vector<8x128xf32> to vector<8x128xbf16>
      %cst_224 = arith.constant dense<0.000000e+00> : vector<8x128xf32>
      %446 = tpu.matmul %445, %0, %cst_224 {dimension_numbers = #tpu.dot_dimension_numbers<[1], [0], [0], [1], [0, 0, 1, 1], [], []>} : vector<8x128xbf16>, vector<128x128xbf16>, vector<8x128xf32> -> vector<8x128xf32>
      %447 = arith.addf %446, %3 : vector<8x128xf32>
      %c0_225 = arith.constant 0 : index
      %c0_226 = arith.constant 0 : index
      %448 = vector.load %arg7[%c0_225, %c0_226] : memref<8x128xf32, #tpu.memory_space<vmem>>, vector<8x128xf32>
      %cst_227 = arith.constant -7.000000e+01 : f32
      %449 = vector.broadcast %cst_227 : f32 to vector<8x128xf32>
      %450 = arith.subf %448, %449 : vector<8x128xf32>
      %cst_228 = arith.constant -2.500000e-03 : f32
      %451 = vector.broadcast %cst_228 : f32 to vector<8x128xf32>
      %452 = arith.mulf %451, %450 : vector<8x128xf32>
      %cst_229 = arith.constant 1.000000e+00 : f32
      %453 = vector.broadcast %cst_229 : f32 to vector<8x128xf32>
      %454 = arith.mulf %453, %447 : vector<8x128xf32>
      %455 = arith.addf %452, %454 : vector<8x128xf32>
      %cst_230 = arith.constant 1.17532682 : f32
      %456 = vector.broadcast %cst_230 : f32 to vector<8x128xf32>
      %457 = arith.mulf %456, %455 : vector<8x128xf32>
      %458 = arith.addf %448, %457 : vector<8x128xf32>
      %cst_231 = arith.constant -5.000000e+01 : f32
      %459 = vector.broadcast %cst_231 : f32 to vector<8x128xf32>
      %460 = arith.subf %448, %459 : vector<8x128xf32>
      %cst_232 = arith.constant 0.000000e+00 : f32
      %461 = vector.broadcast %cst_232 : f32 to vector<8x128xf32>
      %462 = arith.cmpf ogt, %460, %461 : vector<8x128xf32>
      %463 = arith.extui %462 : vector<8x128xi1> to vector<8x128xi32>
      %464 = arith.sitofp %463 : vector<8x128xi32> to vector<8x128xf32>
      %cst_233 = arith.constant -7.000000e+01 : f32
      %465 = vector.broadcast %cst_233 : f32 to vector<8x128xf32>
      %466 = arith.subf %458, %465 : vector<8x128xf32>
      %467 = arith.mulf %464, %466 : vector<8x128xf32>
      %468 = arith.subf %458, %467 : vector<8x128xf32>
      %469 = arith.index_cast %c7_i32 : i32 to index
      %c0_234 = arith.constant 0 : index
      %c0_235 = arith.constant 0 : index
      %470 = vector.load %arg4[%469, %c0_234, %c0_235] : memref<8x8x128xf32, #tpu.memory_space<vmem>>, vector<1x8x128xf32>
      %471 = vector.shape_cast %470 : vector<1x8x128xf32> to vector<8x128xf32>
      %472 = vector.shape_cast %464 : vector<8x128xf32> to vector<1x8x128xf32>
      tpu.vector_store %arg4[%469, %c0_234, %c0_235], %472 {strides = array<i32>} : memref<8x8x128xf32, #tpu.memory_space<vmem>>, vector<1x8x128xf32>,
      %c0_236 = arith.constant 0 : index
      %c0_237 = arith.constant 0 : index
      %473 = vector.load %arg7[%c0_236, %c0_237] : memref<8x128xf32, #tpu.memory_space<vmem>>, vector<8x128xf32>
      tpu.vector_store %arg7[%c0_236, %c0_237], %468 {strides = array<i32>} : memref<8x128xf32, #tpu.memory_space<vmem>>, vector<8x128xf32>,
      %c8_i32 = arith.constant 8 : i32
    } else {
    }
    return
  }
  func.func @transform_0(%arg0: i32) -> (i32, i32, i32) {
    %c0_i32 = arith.constant 0 : i32
    %c0_i32_0 = arith.constant 0 : i32
    %c0_i32_1 = arith.constant 0 : i32
    return %arg0, %c0_i32, %c0_i32_0 : i32, i32, i32
  }
  func.func @transform_1(%arg0: i32) -> (i32, i32) {
    %c0_i32 = arith.constant 0 : i32
    %c0_i32_0 = arith.constant 0 : i32
    %c0_i32_1 = arith.constant 0 : i32
    return %c0_i32, %c0_i32_0 : i32, i32
  }
  func.func @transform_2(%arg0: i32) -> (i32, i32) {
    %c0_i32 = arith.constant 0 : i32
    %c0_i32_0 = arith.constant 0 : i32
    %c0_i32_1 = arith.constant 0 : i32
    return %c0_i32, %c0_i32_0 : i32, i32
  }
  func.func @transform_3(%arg0: i32) -> (i32, i32, i32) {
    %c0_i32 = arith.constant 0 : i32
    %c0_i32_0 = arith.constant 0 : i32
    %c0_i32_1 = arith.constant 0 : i32
    return %arg0, %c0_i32, %c0_i32_0 : i32, i32, i32
  }
  func.func @transform_4(%arg0: i32) -> (i32, i32, i32) {
    %c0_i32 = arith.constant 0 : i32
    %c0_i32_0 = arith.constant 0 : i32
    %c0_i32_1 = arith.constant 0 : i32
    return %arg0, %c0_i32, %c0_i32_0 : i32, i32, i32
  }
  func.func @transform_5(%arg0: i32) -> (i32, i32) {
    %c0_i32 = arith.constant 0 : i32
    %c0_i32_0 = arith.constant 0 : i32
    %c0_i32_1 = arith.constant 0 : i32
    return %c0_i32, %c0_i32_0 : i32, i32
  }
  func.func @transform_6(%arg0: i32) -> (i32, i32) {
    %c0_i32 = arith.constant 0 : i32
    %c0_i32_0 = arith.constant 0 : i32
    %c0_i32_1 = arith.constant 0 : i32
    return %c0_i32, %c0_i32_0 : i32, i32
  }
}

</mosaic_0001>

<bundles_post_ra>
// kernel: fsnn_forward.1
= control target key start
LH: loop header
LB: loop body
LE: loop exit
PB: predicated region body
PF: predicated region fallthrough
CT: control target
= control target key end

     0   :  { %v1157_v1 = vmov 0.0   ;;  %vm1158_vm1 = vmmov 0   ;;  %v1159_v27 = vmov 1.0|1.0   ;;  %s1404_s1 = inlined_call_operand.vmem [shape: bf16[128,128], index: 1, kind: input, shape index: {}]   ;;  %s1405_s0 = inlined_call_operand.vmem [shape: f32[8,8,128], index: 0, kind: input, shape index: {}]   ;;  %s1406_s4 = inlined_call_operand.vmem [shape: f32[8,8,128], index: 4, kind: output, shape index: {1}]   ;;  %s1407_s3 = inlined_call_operand.vmem [shape: f32[8,8,128], index: 3, kind: output, shape index: {0}]   ;;  %s1408_s2 = inlined_call_operand.vmem [shape: f32[1,128], index: 2, kind: input, shape index: {}]   ;;  %s1409_s5 = inlined_call_operand.vmem [shape: f32[8,128], index: 5, kind: output, shape index: {2}]   ;;  %s1410_s6 = inlined_call_operand.vmem [shape: f32[8,128], index: 6, kind: output, shape index: {3}]  }
   0x1   :  { %v1198_v0 = vld [vmem:[%s1404_s1 + $0x38] sm:$0xff]  ;;  %42 = vst [vmem:[%s1406_s4] sm:$0xff] %v1157_v1  ;;  %v1212_v2 = vld [vmem:[%s1404_s1 + $0x30] sm:$0xff]  ;;  %v881_v3 = vld [vmem:[%s1405_s0 + $0x8] sm:$0xff] }
   0x2   :  { %43 = vst [vmem:[%s1407_s3] sm:$0xff] %v1157_v1  ;;  %114 = vmatpush.bf16.msra.mxu0 %v1198_v0  ;;  %163 = vmatpush.bf16.msra.mxu1 %v1198_v0  ;;  %v51_v4 = vmul.f32 400.0, %v881_v3  ;;  %v1232_v5 = vld [vmem:[%s1404_s1 + $0x28] sm:$0xff]  ;;  %v1241_v8 = vld [vmem:[%s1404_s1 + $0x20] sm:$0xff]  ;;  %v1250_v11 = vld [vmem:[%s1404_s1 + $0x18] sm:$0xff] }
   0x3   :  { %211 = vmatpush.bf16.msra.mxu2 %v1198_v0  ;;  %259 = vmatpush.bf16.msra.mxu3 %v1198_v0  ;;  %886 = vst [vmem:[%s1406_s4 + $0x8] sm:$0xff] %v1157_v1  ;;  %v1259_v15 = vld [vmem:[%s1404_s1 + $0x10] sm:$0xff]  ;;  %v1276_v20 = vld [vmem:[%s1404_s1 + $0x8] sm:$0xff]  ;;  %v1285_v23 = vld [vmem:[%s1404_s1] sm:$0xff] }
   0x4   :  { %925 = vst [vmem:[%s1407_s3 + $0x8] sm:$0xff] %v1157_v1  ;;  %v53_v6 = vmul.f32 0.0005, %v51_v4  ;;  %v926_v16 = vld [vmem:[%s1405_s0 + $0x10] sm:$0xff]  ;;  %vm919_vm2 = vmpackc.low %vm1158_vm1, %vm1158_vm1  ;;  %v939_v30 = vld [vmem:[%s1405_s0 + $0x18] sm:$0xff] }
   0x5   :  { %v952_v41 = vld [vmem:[%s1405_s0 + $0x20] sm:$0xff]  ;;  %v965_v52 = vld [vmem:[%s1405_s0 + $0x28] sm:$0xff]  ;;  %v978_v63 = vld [vmem:[%s1405_s0 + $0x30] sm:$0xff] }
   0x6   :  { %115 = vmatpush.bf16.msra.mxu0 %v1212_v2  ;;  %164 = vmatpush.bf16.msra.mxu1 %v1212_v2  ;;  %v54_v7 = vadd.f32 -70.0, %v53_v6 }
   0x7   :  { %212 = vmatpush.bf16.msra.mxu2 %v1212_v2  ;;  %260 = vmatpush.bf16.msra.mxu3 %v1212_v2 }
   0x8   :  { %v885_v9 = vadd.f32 70.0, %v54_v7 }
   0xa   :  { %116 = vmatpush.bf16.msra.mxu0 %v1232_v5  ;;  %165 = vmatpush.bf16.msra.mxu1 %v1232_v5  ;;  %v60_v10 = vmul.f32 0.0, %v885_v9 }
   0xb   :  { %213 = vmatpush.bf16.msra.mxu2 %v1232_v5  ;;  %261 = vmatpush.bf16.msra.mxu3 %v1232_v5 }
   0xc   :  { %v61_v12 = vsub.f32 %v54_v7, %v60_v10 }
   0xe   :  { %117 = vmatpush.bf16.msra.mxu0 %v1241_v8  ;;  %166 = vmatpush.bf16.msra.mxu1 %v1241_v8  ;;  %v927_v13 = vadd.f32 70.0, %v61_v12  ;;  %v928_v14 = vadd.f32 50.0, %v61_v12 }
   0xf   :  { %214 = vmatpush.bf16.msra.mxu2 %v1241_v8  ;;  %262 = vmatpush.bf16.msra.mxu3 %v1241_v8 }
  0x10   :  { %v148_v17 = vmul.f32 -0.0025, %v927_v13  ;;  %vm153_vm0 = vcmp.gt.f32.partialorder %v928_v14, 0.0 }
  0x11   :  { %v929_v18 = vsel %vm153_vm0, 1.0, %v1157_v1  ;;  %vm932_vm3 = vmpackc.low %vm153_vm0, %vm153_vm0 }
  0x12   :  { %118 = vmatpush.bf16.msra.mxu0 %v1250_v11  ;;  %167 = vmatpush.bf16.msra.mxu1 %v1250_v11  ;;  %v149_v19 = vadd.f32 %v926_v16, %v148_v17  ;;  %931 = vst [vmem:[%s1406_s4 + $0x10] sm:$0xff] %v929_v18 }
  0x13   :  { %215 = vmatpush.bf16.msra.mxu2 %v1250_v11  ;;  %263 = vmatpush.bf16.msra.mxu3 %v1250_v11 }
  0x14   :  { %v150_v21 = vmul.f32 1.1753268, %v149_v19  ;;  %v1365_v19 = vld [vmem:[%s1408_s2] ss:$0 sm:$0xff] }
  0x16   :  { %119 = vmatpush.bf16.msra.mxu0 %v1259_v15  ;;  %168 = vmatpush.bf16.msra.mxu1 %v1259_v15  ;;  %v151_v22 = vadd.f32 %v150_v21, %v61_v12  ;;  %v991_v12 = vld [vmem:[%s1405_s0 + $0x38] sm:$0xff] }
  0x17   :  { %216 = vmatpush.bf16.msra.mxu2 %v1259_v15  ;;  %264 = vmatpush.bf16.msra.mxu3 %v1259_v15 }
  0x18   :  { %v930_v24 = vadd.f32 70.0, %v151_v22 }
  0x1a   :  { %120 = vmatpush.bf16.msra.mxu0 %v1276_v20  ;;  %169 = vmatpush.bf16.msra.mxu1 %v1276_v20  ;;  %v157_v25 = vmul.f32 %v930_v24, %v929_v18 }
  0x1b   :  { %217 = vmatpush.bf16.msra.mxu2 %v1276_v20  ;;  %265 = vmatpush.bf16.msra.mxu3 %v1276_v20 }
  0x1c   :  { %v158_v26 = vsub.f32 %v151_v22, %v157_v25 }
  0x1e   :  { %121 = vmatpush.bf16.msra.mxu0 %v1285_v23  ;;  %170 = vmatpush.bf16.msra.mxu1 %v1285_v23  ;;  %v940_v28 = vadd.f32 70.0, %v158_v26  ;;  %v941_v29 = vadd.f32 50.0, %v158_v26 }
  0x1f   :  { %218 = vmatpush.bf16.msra.mxu2 %v1285_v23  ;;  %266 = vmatpush.bf16.msra.mxu3 %v1285_v23 }
  0x20   :  { %v196_v31 = vmul.f32 -0.0025, %v940_v28  ;;  %vm201_vm4 = vcmp.gt.f32.partialorder %v941_v29, 0.0 }
  0x21   :  { %920 = vmatmul.msk.bf16.vlgmr.msra.gmra.mxu0 %vm919_vm2, %v1159_v27  ;;  %933 = vmatmul.msk.bf16.vlgmr.msra.gmra.mxu1 %vm932_vm3, %v1159_v27  ;;  %v942_v32 = vsel %vm201_vm4, 1.0, %v1157_v1  ;;  %vm945_vm5 = vmpackc.low %vm201_vm4, %vm201_vm4 }
  0x22   :  { %307 = vmatpush.bf16.msrb.mxu0 %v1198_v0  ;;  %355 = vmatpush.bf16.msrb.mxu1 %v1198_v0  ;;  %v197_v33 = vadd.f32 %v939_v30, %v196_v31  ;;  %944 = vst [vmem:[%s1406_s4 + $0x18] sm:$0xff] %v942_v32 }
  0x23   :  { %403 = vmatpush.bf16.msrb.mxu2 %v1198_v0 }
  0x24   :  { %946 = vmatmul.msk.bf16.vlgmr.msra.gmra.mxu2 %vm945_vm5, %v1159_v27  ;;  %v198_v34 = vmul.f32 1.1753268, %v197_v33 }
  0x26   :  { %308 = vmatpush.bf16.msrb.mxu0 %v1212_v2  ;;  %356 = vmatpush.bf16.msrb.mxu1 %v1212_v2  ;;  %v199_v35 = vadd.f32 %v198_v34, %v158_v26 }
  0x27   :  { %404 = vmatpush.bf16.msrb.mxu2 %v1212_v2 }
  0x28   :  { %v943_v36 = vadd.f32 70.0, %v199_v35 }
  0x2a   :  { %309 = vmatpush.bf16.msrb.mxu0 %v1232_v5  ;;  %357 = vmatpush.bf16.msrb.mxu1 %v1232_v5  ;;  %v205_v37 = vmul.f32 %v943_v36, %v942_v32 }
  0x2b   :  { %405 = vmatpush.bf16.msrb.mxu2 %v1232_v5 }
  0x2c   :  { %v206_v38 = vsub.f32 %v199_v35, %v205_v37 }
  0x2e   :  { %310 = vmatpush.bf16.msrb.mxu0 %v1241_v8  ;;  %358 = vmatpush.bf16.msrb.mxu1 %v1241_v8  ;;  %v953_v39 = vadd.f32 70.0, %v206_v38  ;;  %v954_v40 = vadd.f32 50.0, %v206_v38 }
  0x2f   :  { %406 = vmatpush.bf16.msrb.mxu2 %v1241_v8 }
  0x30   :  { %v244_v42 = vmul.f32 -0.0025, %v953_v39  ;;  %vm249_vm6 = vcmp.gt.f32.partialorder %v954_v40, 0.0 }
  0x31   :  { %v955_v43 = vsel %vm249_vm6, 1.0, %v1157_v1  ;;  %vm958_vm7 = vmpackc.low %vm249_vm6, %vm249_vm6 }
  0x32   :  { %311 = vmatpush.bf16.msrb.mxu0 %v1250_v11  ;;  %359 = vmatpush.bf16.msrb.mxu1 %v1250_v11  ;;  %v245_v44 = vadd.f32 %v952_v41, %v244_v42  ;;  %957 = vst [vmem:[%s1406_s4 + $0x20] sm:$0xff] %v955_v43 }
  0x33   :  { %407 = vmatpush.bf16.msrb.mxu2 %v1250_v11  ;;  %959 = vmatmul.msk.bf16.vlgmr.msra.gmra.mxu3 %vm958_vm7, %v1159_v27 }
  0x34   :  { %v246_v45 = vmul.f32 1.1753268, %v245_v44 }
  0x36   :  { %312 = vmatpush.bf16.msrb.mxu0 %v1259_v15  ;;  %360 = vmatpush.bf16.msrb.mxu1 %v1259_v15  ;;  %v247_v46 = vadd.f32 %v246_v45, %v206_v38 }
  0x37   :  { %408 = vmatpush.bf16.msrb.mxu2 %v1259_v15 }
  0x38   :  { %v956_v47 = vadd.f32 70.0, %v247_v46 }
  0x3a   :  { %313 = vmatpush.bf16.msrb.mxu0 %v1276_v20  ;;  %361 = vmatpush.bf16.msrb.mxu1 %v1276_v20  ;;  %v253_v48 = vmul.f32 %v956_v47, %v955_v43 }
  0x3b   :  { %409 = vmatpush.bf16.msrb.mxu2 %v1276_v20 }
  0x3c   :  { %v254_v49 = vsub.f32 %v247_v46, %v253_v48 }
  0x3e   :  { %314 = vmatpush.bf16.msrb.mxu0 %v1285_v23  ;;  %362 = vmatpush.bf16.msrb.mxu1 %v1285_v23  ;;  %v966_v50 = vadd.f32 70.0, %v254_v49  ;;  %v967_v51 = vadd.f32 50.0, %v254_v49 }
  0x3f   :  { %410 = vmatpush.bf16.msrb.mxu2 %v1285_v23 }
  0x40   :  { %v292_v53 = vmul.f32 -0.0025, %v966_v50  ;;  %vm297_vm8 = vcmp.gt.f32.partialorder %v967_v51, 0.0 }
  0x41   :  { %v968_v54 = vsel %vm297_vm8, 1.0, %v1157_v1  ;;  %vm971_vm9 = vmpackc.low %vm297_vm8, %vm297_vm8 }
  0x42   :  { %v293_v55 = vadd.f32 %v965_v52, %v292_v53  ;;  %970 = vst [vmem:[%s1406_s4 + $0x28] sm:$0xff] %v968_v54  ;;  %972 = vmatmul.msk.bf16.vlgmr.msrb.gmra.mxu0 %vm971_vm9, %v1159_v27 }
  0x44   :  { %v294_v56 = vmul.f32 1.1753268, %v293_v55 }
  0x46   :  { %v295_v57 = vadd.f32 %v294_v56, %v254_v49 }
  0x48   :  { %v969_v58 = vadd.f32 70.0, %v295_v57 }
  0x4a   :  { %v301_v59 = vmul.f32 %v969_v58, %v968_v54 }
  0x4c   :  { %v302_v60 = vsub.f32 %v295_v57, %v301_v59 }
  0x4e   :  { %v979_v61 = vadd.f32 70.0, %v302_v60  ;;  %v980_v62 = vadd.f32 50.0, %v302_v60 }
  0x50   :  { %v340_v0 = vmul.f32 -0.0025, %v979_v61  ;;  %vm345_vm10 = vcmp.gt.f32.partialorder %v980_v62, 0.0 }
  0x51   :  { %v981_v2 = vsel %vm345_vm10, 1.0, %v1157_v1  ;;  %vm984_vm11 = vmpackc.low %vm345_vm10, %vm345_vm10 }
  0x52   :  { %v341_v3 = vadd.f32 %v978_v63, %v340_v0  ;;  %983 = vst [vmem:[%s1406_s4 + $0x30] sm:$0xff] %v981_v2  ;;  %985 = vmatmul.msk.bf16.vlgmr.msrb.gmra.mxu1 %vm984_vm11, %v1159_v27 }
  0x54   :  { %v342_v4 = vmul.f32 1.1753268, %v341_v3 }
  0x56   :  { %v343_v5 = vadd.f32 %v342_v4, %v302_v60 }
  0x58   :  { %v982_v6 = vadd.f32 70.0, %v343_v5 }
  0x5a   :  { %v349_v7 = vmul.f32 %v982_v6, %v981_v2 }
  0x5c   :  { %v350_v8 = vsub.f32 %v343_v5, %v349_v7 }
  0x5e   :  { %v993_v9 = vadd.f32 50.0, %v350_v8  ;;  %v992_v10 = vadd.f32 70.0, %v350_v8 }
  0x60   :  { %vm393_vm12 = vcmp.gt.f32.partialorder %v993_v9, 0.0  ;;  %v388_v13 = vmul.f32 -0.0025, %v992_v10 }
  0x61   :  { %vm997_vm13 = vmpackc.low %vm393_vm12, %vm393_vm12  ;;  %v994_v11 = vsel %vm393_vm12, 1.0, %v1157_v1 }
  0x62   :  { %998 = vmatmul.msk.bf16.vlgmr.msrb.gmra.mxu2 %vm997_vm13, %v1159_v27  ;;  %996 = vst [vmem:[%s1406_s4 + $0x38] sm:$0xff] %v994_v11  ;;  %v389_v14 = vadd.f32 %v991_v12, %v388_v13 }
  0x64   :  { %v390_v15 = vmul.f32 1.1753268, %v389_v14 }
  0x66   :  { %v391_v16 = vadd.f32 %v390_v15, %v350_v8 }
  0x68   :  { %v995_v17 = vadd.f32 70.0, %v391_v16 }
  0x6a   :  { %v397_v18 = vmul.f32 %v995_v17, %v994_v11 }
  0x6c   :  { %v398_v20 = vsub.f32 %v391_v16, %v397_v18 }
  0x6e   :  { %401 = vst [vmem:[%s1409_s5] sm:$0xff] %v398_v20 }
  0x9e   :  { %v123_v21 = vpop.f32.mrf.mxu0  ;;  %v172_v22 = vpop.f32.mrf.mxu1 }
  0x9f   :  { %v124_v23 = vadd.f32 %v1365_v19, %v123_v21  ;;  %v173_v33 = vadd.f32 %v1365_v19, %v172_v22 }
  0xa1   :  { %v130_v24 = vmul.f32 400.0, %v124_v23 }
  0xa3   :  { %v132_v25 = vmul.f32 0.0005, %v130_v24 }
  0xa5   :  { %v133_v28 = vadd.f32 -70.0, %v132_v25 }
  0xa6   :  { %v125_v26 = vpop.f32.mrf.mxu0  ;;  %v174_v27 = vpop.f32.mrf.mxu1 }
  0xa7   :  { %v220_v29 = vpop.f32.mrf.mxu2  ;;  %v924_v30 = vadd.f32 70.0, %v133_v28 }
  0xa8   :  { %v221_v46 = vadd.f32 %v1365_v19, %v220_v29 }
  0xa9   :  { %v139_v31 = vmul.f32 0.0, %v924_v30 }
  0xab   :  { %v140_v32 = vsub.f32 %v133_v28, %v139_v31 }
  0xad   :  { %v934_v34 = vadd.f32 70.0, %v140_v32  ;;  %v935_v35 = vadd.f32 50.0, %v140_v32 }
  0xaf   :  { %v222_v36 = vpop.f32.mrf.mxu2  ;;  %v178_v37 = vmul.f32 -0.0025, %v934_v34  ;;  %vm183_vm14 = vcmp.gt.f32.partialorder %v935_v35, 0.0 }
  0xb0   :  { %v936_v38 = vsel %vm183_vm14, 1.0, %v1157_v1 }
  0xb1   :  { %v179_v39 = vadd.f32 %v178_v37, %v173_v33  ;;  %938 = vst [vmem:[%s1407_s3 + $0x10] sm:$0xff] %v936_v38 }
  0xb3   :  { %v180_v40 = vmul.f32 1.1753268, %v179_v39 }
  0xb5   :  { %v181_v41 = vadd.f32 %v180_v40, %v140_v32 }
  0xb6   :  { %v268_v42 = vpop.f32.mrf.mxu3 }
  0xb7   :  { %v937_v43 = vadd.f32 70.0, %v181_v41  ;;  %v269_v60 = vadd.f32 %v1365_v19, %v268_v42 }
  0xb9   :  { %v187_v44 = vmul.f32 %v937_v43, %v936_v38 }
  0xbb   :  { %v188_v45 = vsub.f32 %v181_v41, %v187_v44 }
  0xbd   :  { %v947_v47 = vadd.f32 70.0, %v188_v45  ;;  %v948_v48 = vadd.f32 50.0, %v188_v45 }
  0xbe   :  { %v270_v49 = vpop.f32.mrf.mxu3 }
  0xbf   :  { %v226_v50 = vmul.f32 -0.0025, %v947_v47  ;;  %vm231_vm15 = vcmp.gt.f32.partialorder %v948_v48, 0.0  ;;  %v316_v52 = vpop.f32.mrf.mxu0 }
  0xc0   :  { %v949_v51 = vsel %vm231_vm15, 1.0, %v1157_v1  ;;  %v317_v10 = vadd.f32 %v1365_v19, %v316_v52 }
  0xc1   :  { %v227_v53 = vadd.f32 %v226_v50, %v221_v46  ;;  %951 = vst [vmem:[%s1407_s3 + $0x18] sm:$0xff] %v949_v51 }
  0xc3   :  { %v228_v54 = vmul.f32 1.1753268, %v227_v53 }
  0xc5   :  { %v229_v55 = vadd.f32 %v228_v54, %v188_v45 }
  0xc7   :  { %v950_v56 = vadd.f32 70.0, %v229_v55  ;;  %v318_v57 = vpop.f32.mrf.mxu0 }
  0xc9   :  { %v235_v58 = vmul.f32 %v950_v56, %v949_v51 }
  0xcb   :  { %v236_v59 = vsub.f32 %v229_v55, %v235_v58 }
  0xcd   :  { %v960_v61 = vadd.f32 70.0, %v236_v59  ;;  %v961_v62 = vadd.f32 50.0, %v236_v59 }
  0xcf   :  { %v274_v63 = vmul.f32 -0.0025, %v960_v61  ;;  %vm279_vm0 = vcmp.gt.f32.partialorder %v961_v62, 0.0  ;;  %v364_v2 = vpop.f32.mrf.mxu1 }
  0xd0   :  { %v962_v0 = vsel %vm279_vm0, 1.0, %v1157_v1  ;;  %v365_v23 = vadd.f32 %v1365_v19, %v364_v2 }
  0xd1   :  { %v275_v3 = vadd.f32 %v274_v63, %v269_v60  ;;  %964 = vst [vmem:[%s1407_s3 + $0x20] sm:$0xff] %v962_v0 }
  0xd3   :  { %v276_v4 = vmul.f32 1.1753268, %v275_v3 }
  0xd5   :  { %v277_v5 = vadd.f32 %v276_v4, %v236_v59 }
  0xd7   :  { %v963_v6 = vadd.f32 70.0, %v277_v5  ;;  %v366_v7 = vpop.f32.mrf.mxu1 }
  0xd9   :  { %v283_v8 = vmul.f32 %v963_v6, %v962_v0 }
  0xdb   :  { %v284_v9 = vsub.f32 %v277_v5, %v283_v8 }
  0xdd   :  { %v973_v11 = vadd.f32 70.0, %v284_v9  ;;  %v974_v12 = vadd.f32 50.0, %v284_v9 }
  0xdf   :  { %v322_v13 = vmul.f32 -0.0025, %v973_v11  ;;  %vm327_vm1 = vcmp.gt.f32.partialorder %v974_v12, 0.0 }
  0xe0   :  { %v975_v14 = vsel %vm327_vm1, 1.0, %v1157_v1 }
  0xe1   :  { %v323_v15 = vadd.f32 %v322_v13, %v317_v10  ;;  %977 = vst [vmem:[%s1407_s3 + $0x28] sm:$0xff] %v975_v14 }
  0xe3   :  { %v324_v16 = vmul.f32 1.1753268, %v323_v15 }
  0xe5   :  { %v325_v17 = vadd.f32 %v324_v16, %v284_v9  ;;  %v412_v18 = vpop.f32.mrf.mxu2 }
  0xe6   :  { %v413_v35 = vadd.f32 %v1365_v19, %v412_v18 }
  0xe7   :  { %v976_v20 = vadd.f32 70.0, %v325_v17 }
  0xe9   :  { %v331_v21 = vmul.f32 %v976_v20, %v975_v14 }
  0xeb   :  { %v332_v22 = vsub.f32 %v325_v17, %v331_v21 }
  0xed   :  { %v986_v24 = vadd.f32 70.0, %v332_v22  ;;  %v987_v25 = vadd.f32 50.0, %v332_v22  ;;  %v414_v26 = vpop.f32.mrf.mxu2 }
  0xef   :  { %v370_v27 = vmul.f32 -0.0025, %v986_v24  ;;  %vm375_vm2 = vcmp.gt.f32.partialorder %v987_v25, 0.0 }
  0xf0   :  { %v988_v28 = vsel %vm375_vm2, 1.0, %v1157_v1 }
  0xf1   :  { %v371_v29 = vadd.f32 %v370_v27, %v365_v23  ;;  %990 = vst [vmem:[%s1407_s3 + $0x30] sm:$0xff] %v988_v28 }
  0xf3   :  { %v372_v30 = vmul.f32 1.1753268, %v371_v29 }
  0xf5   :  { %v373_v31 = vadd.f32 %v372_v30, %v332_v22 }
  0xf7   :  { %v989_v32 = vadd.f32 70.0, %v373_v31 }
  0xf9   :  { %v379_v33 = vmul.f32 %v989_v32, %v988_v28 }
  0xfb   :  { %v380_v34 = vsub.f32 %v373_v31, %v379_v33 }
  0xfd   :  { %v999_v36 = vadd.f32 70.0, %v380_v34  ;;  %v1000_v37 = vadd.f32 50.0, %v380_v34 }
  0xff   :  { %v418_v38 = vmul.f32 -0.0025, %v999_v36  ;;  %vm423_vm3 = vcmp.gt.f32.partialorder %v1000_v37, 0.0 }
 0x100   :  { %v1001_v39 = vsel %vm423_vm3, 1.0, %v1157_v1 }
 0x101   :  { %v419_v40 = vadd.f32 %v418_v38, %v413_v35  ;;  %1003 = vst [vmem:[%s1407_s3 + $0x38] sm:$0xff] %v1001_v39 }
 0x103   :  { %v420_v41 = vmul.f32 1.1753268, %v419_v40 }
 0x105   :  { %v421_v42 = vadd.f32 %v420_v41, %v380_v34 }
 0x107   :  { %v1002_v43 = vadd.f32 70.0, %v421_v42 }
 0x109   :  { %v427_v44 = vmul.f32 %v1002_v43, %v1001_v39 }
 0x10b   :  { %v428_v45 = vsub.f32 %v421_v42, %v427_v44 }
 0x10d   :  { %431 = vst [vmem:[%s1410_s6] sm:$0xff] %v428_v45 }

</bundles_post_ra>
